<compile_context>
chip_gen: v7x
topology: tpu7x:2x2x1
jax: 0.10.0
libtpu: 0.0.40
codegen_flags: <defaults>
</compile_context>

<pallas_src>
import functools

import jax
import jax.numpy as jnp
from jax import lax
from jax.experimental import pallas as pl
from jax.experimental.pallas import tpu as pltpu


_VMEM_LIMIT_BYTES = 32 * 1024 * 1024            # safe on v5e/v6e/v7x scoped VMEM
_MM_DIM_SEMANTICS = ("parallel", "parallel", "arbitrary")


# ----------------------------------------------------------------------------
# Small shape helpers (padding to (8,128)-legal, lane-dense tiles).
# ----------------------------------------------------------------------------
def _round_up(x, m):
    return (x + m - 1) // m * m


def _tile_and_pad(dim, max_tile=512, align=128):
    """Pick a tile edge that is a multiple of 128 (legal in both sublane and lane
    position) and the padded extent it evenly divides."""
    if dim < max_tile:
        t = _round_up(max(dim, 1), align)
        return t, t
    return max_tile, _round_up(dim, max_tile)


def _pad2d(x, rows, cols):
    pr, pc = rows - x.shape[0], cols - x.shape[1]
    if pr or pc:
        x = jnp.pad(x, ((0, pr), (0, pc)))
    return x


def _mm_compiler_params():
    return pltpu.CompilerParams(
        dimension_semantics=_MM_DIM_SEMANTICS,
        vmem_limit_bytes=_VMEM_LIMIT_BYTES)


# ----------------------------------------------------------------------------
# Kernel 1a: student-side RGC tile:  new_S = R @ P, with fused layer-sum epilogue.
#   grid = (ns/tm, 1, np/tk); axis 2 is the contraction (reduction) axis.
# ----------------------------------------------------------------------------
def _rgc_row_kernel(r_ref, emb_ref, sum_ref, out_ref, sumout_ref, acc_ref):
    @pl.when(pl.program_id(2) == 0)
    def _init():
        acc_ref[...] = jnp.zeros_like(acc_ref)

    acc_ref[...] += jnp.dot(r_ref[...], emb_ref[...],
                            preferred_element_type=jnp.float32)

    @pl.when(pl.program_id(2) == pl.num_programs(2) - 1)
    def _finalize():
        acc = acc_ref[...]
        out_ref[...] = acc.astype(out_ref.dtype)
        sumout_ref[...] = sum_ref[...] + acc


# ----------------------------------------------------------------------------
# Kernel 1b: problem-side RGC tile:  new_P = R^T @ S  (contraction over R dim 0,
#   no transpose materialized), with fused layer-sum epilogue.
#   grid = (np/tm, 1, ns/tk).
# ----------------------------------------------------------------------------
def _rgc_col_kernel(r_ref, emb_ref, sum_ref, out_ref, sumout_ref, acc_ref):
    @pl.when(pl.program_id(2) == 0)
    def _init():
        acc_ref[...] = jnp.zeros_like(acc_ref)

    acc_ref[...] += lax.dot_general(
        r_ref[...], emb_ref[...],
        dimension_numbers=(((0,), (0,)), ((), ())),
        preferred_element_type=jnp.float32)

    @pl.when(pl.program_id(2) == pl.num_programs(2) - 1)
    def _finalize():
        acc = acc_ref[...]
        out_ref[...] = acc.astype(out_ref.dtype)
        sumout_ref[...] = sum_ref[...] + acc


# ----------------------------------------------------------------------------
# Kernel 2: o = x @ y + z   (q_matrix @ skill_embeds fused with problem layer-mean).
# ----------------------------------------------------------------------------
def _matmul_add_kernel(x_ref, y_ref, z_ref, o_ref, acc_ref):
    @pl.when(pl.program_id(2) == 0)
    def _init():
        acc_ref[...] = jnp.zeros_like(acc_ref)

    acc_ref[...] += jnp.dot(x_ref[...], y_ref[...],
                            preferred_element_type=jnp.float32)

    @pl.when(pl.program_id(2) == pl.num_programs(2) - 1)
    def _finalize():
        o_ref[...] = (acc_ref[...] + z_ref[...]).astype(o_ref.dtype)


# ----------------------------------------------------------------------------
# Kernel 3: prediction head.
#   logit = concat([bs, bp], -1) @ W^T + b ; out = sigmoid(logit)
#   (expressed as two partial row-reductions against the split weight; bias in SMEM)
# ----------------------------------------------------------------------------
def _predict_kernel(bs_ref, bp_ref, ws_ref, wp_ref, bias_ref, o_ref):
    bias = bias_ref[0]
    logit = (jnp.sum(bs_ref[...] * ws_ref[...], axis=-1, keepdims=True)
             + jnp.sum(bp_ref[...] * wp_ref[...], axis=-1, keepdims=True)
             + bias)
    o_ref[...] = jax.nn.sigmoid(logit)


# ----------------------------------------------------------------------------
# Pallas wrappers.
# ----------------------------------------------------------------------------
def rgc_student_update(r, p_embeds, sum_s, *, tm, tk):
    ns_p, np_p = r.shape
    d_p = p_embeds.shape[1]
    grid = (ns_p // tm, 1, np_p // tk)
    return pl.pallas_call(
        _rgc_row_kernel,
        out_shape=(jax.ShapeDtypeStruct((ns_p, d_p), jnp.bfloat16),
                   jax.ShapeDtypeStruct((ns_p, d_p), jnp.float32)),
        grid_spec=pltpu.PrefetchScalarGridSpec(
            num_scalar_prefetch=0,
            grid=grid,
            in_specs=[
                pl.BlockSpec((tm, tk), lambda i, j, k: (i, k)),
                pl.BlockSpec((tk, d_p), lambda i, j, k: (k, j)),
                pl.BlockSpec((tm, d_p), lambda i, j, k: (i, j)),
            ],
            out_specs=(
                pl.BlockSpec((tm, d_p), lambda i, j, k: (i, j)),
                pl.BlockSpec((tm, d_p), lambda i, j, k: (i, j)),
            ),
            scratch_shapes=[pltpu.VMEM((tm, d_p), jnp.float32)],
        ),
        compiler_params=_mm_compiler_params(),
    )(r, p_embeds, sum_s)


def rgc_problem_update(r, s_embeds, sum_p, *, tm, tk):
    ns_p, np_p = r.shape
    d_p = s_embeds.shape[1]
    grid = (np_p // tm, 1, ns_p // tk)
    return pl.pallas_call(
        _rgc_col_kernel,
        out_shape=(jax.ShapeDtypeStruct((np_p, d_p), jnp.bfloat16),
                   jax.ShapeDtypeStruct((np_p, d_p), jnp.float32)),
        grid_spec=pltpu.PrefetchScalarGridSpec(
            num_scalar_prefetch=0,
            grid=grid,
            in_specs=[
                pl.BlockSpec((tk, tm), lambda i, j, k: (k, i)),
                pl.BlockSpec((tk, d_p), lambda i, j, k: (k, j)),
                pl.BlockSpec((tm, d_p), lambda i, j, k: (i, j)),
            ],
            out_specs=(
                pl.BlockSpec((tm, d_p), lambda i, j, k: (i, j)),
                pl.BlockSpec((tm, d_p), lambda i, j, k: (i, j)),
            ),
            scratch_shapes=[pltpu.VMEM((tm, d_p), jnp.float32)],
        ),
        compiler_params=_mm_compiler_params(),
    )(r, s_embeds, sum_p)


def matmul_add(x, y, z, *, tm, tk):
    m, kd = x.shape
    n = y.shape[1]
    grid = (m // tm, 1, kd // tk)
    return pl.pallas_call(
        _matmul_add_kernel,
        out_shape=jax.ShapeDtypeStruct((m, n), jnp.float32),
        grid_spec=pltpu.PrefetchScalarGridSpec(
            num_scalar_prefetch=0,
            grid=grid,
            in_specs=[
                pl.BlockSpec((tm, tk), lambda i, j, k: (i, k)),
                pl.BlockSpec((tk, n), lambda i, j, k: (k, j)),
                pl.BlockSpec((tm, n), lambda i, j, k: (i, j)),
            ],
            out_specs=pl.BlockSpec((tm, n), lambda i, j, k: (i, j)),
            scratch_shapes=[pltpu.VMEM((tm, n), jnp.float32)],
        ),
        compiler_params=_mm_compiler_params(),
    )(x, y, z)


def predict_head(bs, bp, w_s, w_p, bias):
    b, d = bs.shape
    return pl.pallas_call(
        _predict_kernel,
        out_shape=jax.ShapeDtypeStruct((b, 1), jnp.float32),
        grid=(1,),
        in_specs=[
            pl.BlockSpec((b, d), lambda i: (0, 0)),
            pl.BlockSpec((b, d), lambda i: (0, 0)),
            pl.BlockSpec((1, d), lambda i: (0, 0)),
            pl.BlockSpec((1, d), lambda i: (0, 0)),
            pl.BlockSpec(memory_space=pltpu.MemorySpace.SMEM),   # scalar bias
        ],
        out_specs=pl.BlockSpec((b, 1), lambda i: (0, 0)),
    )(bs, bp, w_s, w_p, bias)


# ----------------------------------------------------------------------------
# Parameter init (deterministic, Xavier-uniform like the PyTorch module).
# ----------------------------------------------------------------------------
def xavier_uniform(key, shape):
    fan_out, fan_in = shape[0], shape[1]
    bound = (6.0 / (fan_in + fan_out)) ** 0.5
    return jax.random.uniform(key, shape, jnp.float32, -bound, bound)


def init_params(key, num_students, num_problems, num_skills, embed_dim):
    k1, k2, k3, k4 = jax.random.split(key, 4)
    return {
        "student_embeds": xavier_uniform(k1, (num_students, embed_dim)),
        "problem_embeds": xavier_uniform(k2, (num_problems, embed_dim)),
        "skill_embeds": xavier_uniform(k3, (num_skills, embed_dim)),
        # nn.Linear(embed_dim*2, 1): weight (1, 2D), bias zero-init.
        "predict_w": xavier_uniform(k4, (1, 2 * embed_dim)),
        "predict_b": jnp.zeros((1,), jnp.float32),
    }


# ----------------------------------------------------------------------------
# ORCDF forward pass (glue in JAX, compute in Pallas kernels).
# ----------------------------------------------------------------------------
@functools.partial(jax.jit, static_argnames=("num_layers",))
def orcdf_forward(params, student_ids, problem_ids, a_matrix, ia_matrix,
                  q_matrix, num_layers):
    d = params["student_embeds"].shape[1]
    ns, np_ = a_matrix.shape
    nsk = q_matrix.shape[1]

    d_pad = _round_up(d, 128)                      # lane-dense embedding width
    ns_tile, ns_pad = _tile_and_pad(ns)
    np_tile, np_pad = _tile_and_pad(np_)
    nsk_tile, nsk_pad = _tile_and_pad(nsk)

    # Fuse correct/incorrect propagation:  A@P + IA@P == (A+IA)@P  (and same for
    # the transposed side).  R is integer-valued -> exact in bf16; one matrix
    # streams per matmul instead of two.
    r = _pad2d((a_matrix + ia_matrix).astype(jnp.bfloat16), ns_pad, np_pad)

    s0 = _pad2d(params["student_embeds"], ns_pad, d_pad)
    p0 = _pad2d(params["problem_embeds"], np_pad, d_pad)
    skill = _pad2d(params["skill_embeds"], nsk_pad, d_pad).astype(jnp.bfloat16)
    q = _pad2d(q_matrix, np_pad, nsk_pad).astype(jnp.bfloat16)

    cur_s = s0.astype(jnp.bfloat16)
    cur_p = p0.astype(jnp.bfloat16)
    sum_s = s0            # f32 running sum over layers (fused into the kernels)
    sum_p = p0

    for _ in range(num_layers):
        new_s, sum_s = rgc_student_update(r, cur_p, sum_s, tm=ns_tile, tk=np_tile)
        new_p, sum_p = rgc_problem_update(r, cur_s, sum_p, tm=np_tile, tk=ns_tile)
        cur_s, cur_p = new_s, new_p

    inv = 1.0 / float(num_layers + 1)
    final_s = sum_s * inv
    # q @ skill_embeds fused with the problem-side layer mean.
    final_p = matmul_add(q, skill, sum_p * inv, tm=np_tile, tk=nsk_tile)

    final_s = final_s[:ns, :d]
    final_p = final_p[:np_, :d]

    batch_s = final_s[student_ids]                 # (B, D) gather — glue
    batch_p = final_p[problem_ids]                 # (B, D) gather — glue

    w = params["predict_w"]                        # (1, 2D)
    w_s = w[:, :d]
    w_p = w[:, d:]
    pred = predict_head(batch_s, batch_p, w_s, w_p, params["predict_b"])
    return jnp.squeeze(pred)                       # matches torch .squeeze()


# ----------------------------------------------------------------------------
# Demo / smoke test.
# ----------------------------------------------------------------------------
if __name__ == "__main__":
    num_students = 32
    num_problems = 48
    num_skills = 16
    embed_dim = 32
    num_layers = 2
    batch = 8

    key = jax.random.PRNGKey(0)
    pkey, akey, iakey, qkey, skey, prkey = jax.random.split(key, 6)

    params = init_params(pkey, num_students, num_problems, num_skills,
                         embed_dim)

    # Dense stand-ins for the (sparse) interaction / q matrices.
    a_matrix = jax.random.bernoulli(
        akey, 0.25, (num_students, num_problems)).astype(jnp.float32)
    ia_raw = jax.random.bernoulli(
        iakey, 0.25, (num_students, num_problems)).astype(jnp.float32)
    ia_matrix = ia_raw * (1.0 - a_matrix)   # disjoint from correct responses
    q_matrix = jax.random.bernoulli(
        qkey, 0.3, (num_problems, num_skills)).astype(jnp.float32)

    student_ids = jax.random.randint(skey, (batch,), 0, num_students)
    problem_ids = jax.random.randint(prkey, (batch,), 0, num_problems)

    out = orcdf_forward(params, student_ids, problem_ids, a_matrix, ia_matrix,
                        q_matrix, num_layers)
    out = jax.block_until_ready(out)

    assert out.shape == (batch,)
    assert bool(jnp.all((out >= 0.0) & (out <= 1.0)))
    assert bool(jnp.all(jnp.isfinite(out)))
    print("KERNEL_OK")
</pallas_src>

<mosaic_0001>
module attributes {stable_mosaic.version = 11 : i64} {
  func.func @_rgc_row_kernel(%arg0: i32, %arg1: i32, %arg2: i32, %arg3: memref<128x128xbf16, #tpu.memory_space<vmem>>, %arg4: memref<128x128xbf16, #tpu.memory_space<vmem>>, %arg5: memref<128x128xf32, #tpu.memory_space<vmem>>, %arg6: memref<128x128xbf16, #tpu.memory_space<vmem>>, %arg7: memref<128x128xf32, #tpu.memory_space<vmem>>, %arg8: memref<128x128xf32, #tpu.memory_space<vmem>>) attributes {dimension_semantics = [#tpu.dimension_semantics<parallel>, #tpu.dimension_semantics<parallel>, #tpu.dimension_semantics<arbitrary>], iteration_bounds = array<i64: 1, 1, 1>, scalar_prefetch = 0 : i64, scratch_operands = 1 : i64, tpu.core_type = #tpu.core_type<tc>, window_params = [{transform_indices = @transform_0, window_bounds = array<i64: 128, 128>}, {transform_indices = @transform_1, window_bounds = array<i64: 128, 128>}, {transform_indices = @transform_2, window_bounds = array<i64: 128, 128>}, {transform_indices = @transform_3, window_bounds = array<i64: 128, 128>}, {transform_indices = @transform_4, window_bounds = array<i64: 128, 128>}]} {
    %c0_i32 = arith.constant 0 : i32
    %0 = arith.cmpi eq, %arg2, %c0_i32 : i32
    %1 = arith.extui %0 : i1 to i32
    %c0_i32_0 = arith.constant 0 : i32
    %2 = arith.cmpi ne, %1, %c0_i32_0 : i32
    scf.if %2 {
      %cst_10 = arith.constant 0.000000e+00 : f32
      %12 = vector.broadcast %cst_10 : f32 to vector<128x128xf32>
      %c0_11 = arith.constant 0 : index
      %c0_12 = arith.constant 0 : index
      %13 = vector.load %arg8[%c0_11, %c0_12] : memref<128x128xf32, #tpu.memory_space<vmem>>, vector<128x128xf32>
      tpu.vector_store %arg8[%c0_11, %c0_12], %12 {strides = array<i32>} : memref<128x128xf32, #tpu.memory_space<vmem>>, vector<128x128xf32>,
    } else {
    }
    %c0 = arith.constant 0 : index
    %c0_1 = arith.constant 0 : index
    %3 = vector.load %arg8[%c0, %c0_1] : memref<128x128xf32, #tpu.memory_space<vmem>>, vector<128x128xf32>
    %c0_2 = arith.constant 0 : index
    %c0_3 = arith.constant 0 : index
    %4 = vector.load %arg3[%c0_2, %c0_3] : memref<128x128xbf16, #tpu.memory_space<vmem>>, vector<128x128xbf16>
    %c0_4 = arith.constant 0 : index
    %c0_5 = arith.constant 0 : index
    %5 = vector.load %arg4[%c0_4, %c0_5] : memref<128x128xbf16, #tpu.memory_space<vmem>>, vector<128x128xbf16>
    %cst = arith.constant dense<0.000000e+00> : vector<128x128xf32>
    %6 = tpu.matmul %4, %5, %cst {dimension_numbers = #tpu.dot_dimension_numbers<[1], [0], [0], [1], [0, 0, 1, 1], [], []>} : vector<128x128xbf16>, vector<128x128xbf16>, vector<128x128xf32> -> vector<128x128xf32>
    %7 = arith.addf %3, %6 : vector<128x128xf32>
    %c0_6 = arith.constant 0 : index
    %c0_7 = arith.constant 0 : index
    %8 = vector.load %arg8[%c0_6, %c0_7] : memref<128x128xf32, #tpu.memory_space<vmem>>, vector<128x128xf32>
    tpu.vector_store %arg8[%c0_6, %c0_7], %7 {strides = array<i32>} : memref<128x128xf32, #tpu.memory_space<vmem>>, vector<128x128xf32>,
    %c0_i32_8 = arith.constant 0 : i32
    %9 = arith.cmpi eq, %arg2, %c0_i32_8 : i32
    %10 = arith.extui %9 : i1 to i32
    %c0_i32_9 = arith.constant 0 : i32
    %11 = arith.cmpi ne, %10, %c0_i32_9 : i32
    scf.if %11 {
      %c0_10 = arith.constant 0 : index
      %c0_11 = arith.constant 0 : index
      %12 = vector.load %arg8[%c0_10, %c0_11] : memref<128x128xf32, #tpu.memory_space<vmem>>, vector<128x128xf32>
      %13 = arith.truncf %12 : vector<128x128xf32> to vector<128x128xbf16>
      %c0_12 = arith.constant 0 : index
      %c0_13 = arith.constant 0 : index
      %14 = vector.load %arg6[%c0_12, %c0_13] : memref<128x128xbf16, #tpu.memory_space<vmem>>, vector<128x128xbf16>
      tpu.vector_store %arg6[%c0_12, %c0_13], %13 {strides = array<i32>} : memref<128x128xbf16, #tpu.memory_space<vmem>>, vector<128x128xbf16>,
      %c0_14 = arith.constant 0 : index
      %c0_15 = arith.constant 0 : index
      %15 = vector.load %arg5[%c0_14, %c0_15] : memref<128x128xf32, #tpu.memory_space<vmem>>, vector<128x128xf32>
      %16 = arith.addf %15, %12 : vector<128x128xf32>
      %c0_16 = arith.constant 0 : index
      %c0_17 = arith.constant 0 : index
      %17 = vector.load %arg7[%c0_16, %c0_17] : memref<128x128xf32, #tpu.memory_space<vmem>>, vector<128x128xf32>
      tpu.vector_store %arg7[%c0_16, %c0_17], %16 {strides = array<i32>} : memref<128x128xf32, #tpu.memory_space<vmem>>, vector<128x128xf32>,
    } else {
    }
    return
  }
  func.func @transform_0(%arg0: i32, %arg1: i32, %arg2: i32) -> (i32, i32) {
    %c0_i32 = arith.constant 0 : i32
    return %arg0, %arg2 : i32, i32
  }
  func.func @transform_1(%arg0: i32, %arg1: i32, %arg2: i32) -> (i32, i32) {
    %c0_i32 = arith.constant 0 : i32
    return %arg2, %arg1 : i32, i32
  }
  func.func @transform_2(%arg0: i32, %arg1: i32, %arg2: i32) -> (i32, i32) {
    %c0_i32 = arith.constant 0 : i32
    return %arg0, %arg1 : i32, i32
  }
  func.func @transform_3(%arg0: i32, %arg1: i32, %arg2: i32) -> (i32, i32) {
    %c0_i32 = arith.constant 0 : i32
    return %arg0, %arg1 : i32, i32
  }
  func.func @transform_4(%arg0: i32, %arg1: i32, %arg2: i32) -> (i32, i32) {
    %c0_i32 = arith.constant 0 : i32
    return %arg0, %arg1 : i32, i32
  }
}

module attributes {stable_mosaic.version = 11 : i64} {
  func.func @_rgc_col_kernel(%arg0: i32, %arg1: i32, %arg2: i32, %arg3: memref<128x128xbf16, #tpu.memory_space<vmem>>, %arg4: memref<128x128xbf16, #tpu.memory_space<vmem>>, %arg5: memref<128x128xf32, #tpu.memory_space<vmem>>, %arg6: memref<128x128xbf16, #tpu.memory_space<vmem>>, %arg7: memref<128x128xf32, #tpu.memory_space<vmem>>, %arg8: memref<128x128xf32, #tpu.memory_space<vmem>>) attributes {dimension_semantics = [#tpu.dimension_semantics<parallel>, #tpu.dimension_semantics<parallel>, #tpu.dimension_semantics<arbitrary>], iteration_bounds = array<i64: 1, 1, 1>, scalar_prefetch = 0 : i64, scratch_operands = 1 : i64, tpu.core_type = #tpu.core_type<tc>, window_params = [{transform_indices = @transform_0, window_bounds = array<i64: 128, 128>}, {transform_indices = @transform_1, window_bounds = array<i64: 128, 128>}, {transform_indices = @transform_2, window_bounds = array<i64: 128, 128>}, {transform_indices = @transform_3, window_bounds = array<i64: 128, 128>}, {transform_indices = @transform_4, window_bounds = array<i64: 128, 128>}]} {
    %c0_i32 = arith.constant 0 : i32
    %0 = arith.cmpi eq, %arg2, %c0_i32 : i32
    %1 = arith.extui %0 : i1 to i32
    %c0_i32_0 = arith.constant 0 : i32
    %2 = arith.cmpi ne, %1, %c0_i32_0 : i32
    scf.if %2 {
      %cst_10 = arith.constant 0.000000e+00 : f32
      %12 = vector.broadcast %cst_10 : f32 to vector<128x128xf32>
      %c0_11 = arith.constant 0 : index
      %c0_12 = arith.constant 0 : index
      %13 = vector.load %arg8[%c0_11, %c0_12] : memref<128x128xf32, #tpu.memory_space<vmem>>, vector<128x128xf32>
      tpu.vector_store %arg8[%c0_11, %c0_12], %12 {strides = array<i32>} : memref<128x128xf32, #tpu.memory_space<vmem>>, vector<128x128xf32>,
    } else {
    }
    %c0 = arith.constant 0 : index
    %c0_1 = arith.constant 0 : index
    %3 = vector.load %arg8[%c0, %c0_1] : memref<128x128xf32, #tpu.memory_space<vmem>>, vector<128x128xf32>
    %c0_2 = arith.constant 0 : index
    %c0_3 = arith.constant 0 : index
    %4 = vector.load %arg3[%c0_2, %c0_3] : memref<128x128xbf16, #tpu.memory_space<vmem>>, vector<128x128xbf16>
    %c0_4 = arith.constant 0 : index
    %c0_5 = arith.constant 0 : index
    %5 = vector.load %arg4[%c0_4, %c0_5] : memref<128x128xbf16, #tpu.memory_space<vmem>>, vector<128x128xbf16>
    %cst = arith.constant dense<0.000000e+00> : vector<128x128xf32>
    %6 = tpu.matmul %4, %5, %cst {dimension_numbers = #tpu.dot_dimension_numbers<[0], [0], [1], [1], [0, 1, 1, 1], [], []>} : vector<128x128xbf16>, vector<128x128xbf16>, vector<128x128xf32> -> vector<128x128xf32>
    %7 = arith.addf %3, %6 : vector<128x128xf32>
    %c0_6 = arith.constant 0 : index
    %c0_7 = arith.constant 0 : index
    %8 = vector.load %arg8[%c0_6, %c0_7] : memref<128x128xf32, #tpu.memory_space<vmem>>, vector<128x128xf32>
    tpu.vector_store %arg8[%c0_6, %c0_7], %7 {strides = array<i32>} : memref<128x128xf32, #tpu.memory_space<vmem>>, vector<128x128xf32>,
    %c0_i32_8 = arith.constant 0 : i32
    %9 = arith.cmpi eq, %arg2, %c0_i32_8 : i32
    %10 = arith.extui %9 : i1 to i32
    %c0_i32_9 = arith.constant 0 : i32
    %11 = arith.cmpi ne, %10, %c0_i32_9 : i32
    scf.if %11 {
      %c0_10 = arith.constant 0 : index
      %c0_11 = arith.constant 0 : index
      %12 = vector.load %arg8[%c0_10, %c0_11] : memref<128x128xf32, #tpu.memory_space<vmem>>, vector<128x128xf32>
      %13 = arith.truncf %12 : vector<128x128xf32> to vector<128x128xbf16>
      %c0_12 = arith.constant 0 : index
      %c0_13 = arith.constant 0 : index
      %14 = vector.load %arg6[%c0_12, %c0_13] : memref<128x128xbf16, #tpu.memory_space<vmem>>, vector<128x128xbf16>
      tpu.vector_store %arg6[%c0_12, %c0_13], %13 {strides = array<i32>} : memref<128x128xbf16, #tpu.memory_space<vmem>>, vector<128x128xbf16>,
      %c0_14 = arith.constant 0 : index
      %c0_15 = arith.constant 0 : index
      %15 = vector.load %arg5[%c0_14, %c0_15] : memref<128x128xf32, #tpu.memory_space<vmem>>, vector<128x128xf32>
      %16 = arith.addf %15, %12 : vector<128x128xf32>
      %c0_16 = arith.constant 0 : index
      %c0_17 = arith.constant 0 : index
      %17 = vector.load %arg7[%c0_16, %c0_17] : memref<128x128xf32, #tpu.memory_space<vmem>>, vector<128x128xf32>
      tpu.vector_store %arg7[%c0_16, %c0_17], %16 {strides = array<i32>} : memref<128x128xf32, #tpu.memory_space<vmem>>, vector<128x128xf32>,
    } else {
    }
    return
  }
  func.func @transform_0(%arg0: i32, %arg1: i32, %arg2: i32) -> (i32, i32) {
    %c0_i32 = arith.constant 0 : i32
    return %arg2, %arg0 : i32, i32
  }
  func.func @transform_1(%arg0: i32, %arg1: i32, %arg2: i32) -> (i32, i32) {
    %c0_i32 = arith.constant 0 : i32
    return %arg2, %arg1 : i32, i32
  }
  func.func @transform_2(%arg0: i32, %arg1: i32, %arg2: i32) -> (i32, i32) {
    %c0_i32 = arith.constant 0 : i32
    return %arg0, %arg1 : i32, i32
  }
  func.func @transform_3(%arg0: i32, %arg1: i32, %arg2: i32) -> (i32, i32) {
    %c0_i32 = arith.constant 0 : i32
    return %arg0, %arg1 : i32, i32
  }
  func.func @transform_4(%arg0: i32, %arg1: i32, %arg2: i32) -> (i32, i32) {
    %c0_i32 = arith.constant 0 : i32
    return %arg0, %arg1 : i32, i32
  }
}

module attributes {stable_mosaic.version = 11 : i64} {
  func.func @_rgc_col_kernel(%arg0: i32, %arg1: i32, %arg2: i32, %arg3: memref<128x128xbf16, #tpu.memory_space<vmem>>, %arg4: memref<128x128xbf16, #tpu.memory_space<vmem>>, %arg5: memref<128x128xf32, #tpu.memory_space<vmem>>, %arg6: memref<128x128xbf16, #tpu.memory_space<vmem>>, %arg7: memref<128x128xf32, #tpu.memory_space<vmem>>, %arg8: memref<128x128xf32, #tpu.memory_space<vmem>>) attributes {dimension_semantics = [#tpu.dimension_semantics<parallel>, #tpu.dimension_semantics<parallel>, #tpu.dimension_semantics<arbitrary>], iteration_bounds = array<i64: 1, 1, 1>, scalar_prefetch = 0 : i64, scratch_operands = 1 : i64, tpu.core_type = #tpu.core_type<tc>, window_params = [{transform_indices = @transform_0, window_bounds = array<i64: 128, 128>}, {transform_indices = @transform_1, window_bounds = array<i64: 128, 128>}, {transform_indices = @transform_2, window_bounds = array<i64: 128, 128>}, {transform_indices = @transform_3, window_bounds = array<i64: 128, 128>}, {transform_indices = @transform_4, window_bounds = array<i64: 128, 128>}]} {
    %c0_i32 = arith.constant 0 : i32
    %0 = arith.cmpi eq, %arg2, %c0_i32 : i32
    %1 = arith.extui %0 : i1 to i32
    %c0_i32_0 = arith.constant 0 : i32
    %2 = arith.cmpi ne, %1, %c0_i32_0 : i32
    scf.if %2 {
      %cst_10 = arith.constant 0.000000e+00 : f32
      %12 = vector.broadcast %cst_10 : f32 to vector<128x128xf32>
      %c0_11 = arith.constant 0 : index
      %c0_12 = arith.constant 0 : index
      %13 = vector.load %arg8[%c0_11, %c0_12] : memref<128x128xf32, #tpu.memory_space<vmem>>, vector<128x128xf32>
      tpu.vector_store %arg8[%c0_11, %c0_12], %12 {strides = array<i32>} : memref<128x128xf32, #tpu.memory_space<vmem>>, vector<128x128xf32>,
    } else {
    }
    %c0 = arith.constant 0 : index
    %c0_1 = arith.constant 0 : index
    %3 = vector.load %arg8[%c0, %c0_1] : memref<128x128xf32, #tpu.memory_space<vmem>>, vector<128x128xf32>
    %c0_2 = arith.constant 0 : index
    %c0_3 = arith.constant 0 : index
    %4 = vector.load %arg3[%c0_2, %c0_3] : memref<128x128xbf16, #tpu.memory_space<vmem>>, vector<128x128xbf16>
    %c0_4 = arith.constant 0 : index
    %c0_5 = arith.constant 0 : index
    %5 = vector.load %arg4[%c0_4, %c0_5] : memref<128x128xbf16, #tpu.memory_space<vmem>>, vector<128x128xbf16>
    %cst = arith.constant dense<0.000000e+00> : vector<128x128xf32>
    %6 = tpu.matmul %4, %5, %cst {dimension_numbers = #tpu.dot_dimension_numbers<[0], [0], [1], [1], [0, 1, 1, 1], [], []>} : vector<128x128xbf16>, vector<128x128xbf16>, vector<128x128xf32> -> vector<128x128xf32>
    %7 = arith.addf %3, %6 : vector<128x128xf32>
    %c0_6 = arith.constant 0 : index
    %c0_7 = arith.constant 0 : index
    %8 = vector.load %arg8[%c0_6, %c0_7] : memref<128x128xf32, #tpu.memory_space<vmem>>, vector<128x128xf32>
    tpu.vector_store %arg8[%c0_6, %c0_7], %7 {strides = array<i32>} : memref<128x128xf32, #tpu.memory_space<vmem>>, vector<128x128xf32>,
    %c0_i32_8 = arith.constant 0 : i32
    %9 = arith.cmpi eq, %arg2, %c0_i32_8 : i32
    %10 = arith.extui %9 : i1 to i32
    %c0_i32_9 = arith.constant 0 : i32
    %11 = arith.cmpi ne, %10, %c0_i32_9 : i32
    scf.if %11 {
      %c0_10 = arith.constant 0 : index
      %c0_11 = arith.constant 0 : index
      %12 = vector.load %arg8[%c0_10, %c0_11] : memref<128x128xf32, #tpu.memory_space<vmem>>, vector<128x128xf32>
      %13 = arith.truncf %12 : vector<128x128xf32> to vector<128x128xbf16>
      %c0_12 = arith.constant 0 : index
      %c0_13 = arith.constant 0 : index
      %14 = vector.load %arg6[%c0_12, %c0_13] : memref<128x128xbf16, #tpu.memory_space<vmem>>, vector<128x128xbf16>
      tpu.vector_store %arg6[%c0_12, %c0_13], %13 {strides = array<i32>} : memref<128x128xbf16, #tpu.memory_space<vmem>>, vector<128x128xbf16>,
      %c0_14 = arith.constant 0 : index
      %c0_15 = arith.constant 0 : index
      %15 = vector.load %arg5[%c0_14, %c0_15] : memref<128x128xf32, #tpu.memory_space<vmem>>, vector<128x128xf32>
      %16 = arith.addf %15, %12 : vector<128x128xf32>
      %c0_16 = arith.constant 0 : index
      %c0_17 = arith.constant 0 : index
      %17 = vector.load %arg7[%c0_16, %c0_17] : memref<128x128xf32, #tpu.memory_space<vmem>>, vector<128x128xf32>
      tpu.vector_store %arg7[%c0_16, %c0_17], %16 {strides = array<i32>} : memref<128x128xf32, #tpu.memory_space<vmem>>, vector<128x128xf32>,
    } else {
    }
    return
  }
  func.func @transform_0(%arg0: i32, %arg1: i32, %arg2: i32) -> (i32, i32) {
    %c0_i32 = arith.constant 0 : i32
    return %arg2, %arg0 : i32, i32
  }
  func.func @transform_1(%arg0: i32, %arg1: i32, %arg2: i32) -> (i32, i32) {
    %c0_i32 = arith.constant 0 : i32
    return %arg2, %arg1 : i32, i32
  }
  func.func @transform_2(%arg0: i32, %arg1: i32, %arg2: i32) -> (i32, i32) {
    %c0_i32 = arith.constant 0 : i32
    return %arg0, %arg1 : i32, i32
  }
  func.func @transform_3(%arg0: i32, %arg1: i32, %arg2: i32) -> (i32, i32) {
    %c0_i32 = arith.constant 0 : i32
    return %arg0, %arg1 : i32, i32
  }
  func.func @transform_4(%arg0: i32, %arg1: i32, %arg2: i32) -> (i32, i32) {
    %c0_i32 = arith.constant 0 : i32
    return %arg0, %arg1 : i32, i32
  }
}

module attributes {stable_mosaic.version = 11 : i64} {
  func.func @_matmul_add_kernel(%arg0: i32, %arg1: i32, %arg2: i32, %arg3: memref<128x128xbf16, #tpu.memory_space<vmem>>, %arg4: memref<128x128xbf16, #tpu.memory_space<vmem>>, %arg5: memref<128x128xf32, #tpu.memory_space<vmem>>, %arg6: memref<128x128xf32, #tpu.memory_space<vmem>>, %arg7: memref<128x128xf32, #tpu.memory_space<vmem>>) attributes {dimension_semantics = [#tpu.dimension_semantics<parallel>, #tpu.dimension_semantics<parallel>, #tpu.dimension_semantics<arbitrary>], iteration_bounds = array<i64: 1, 1, 1>, scalar_prefetch = 0 : i64, scratch_operands = 1 : i64, tpu.core_type = #tpu.core_type<tc>, window_params = [{transform_indices = @transform_0, window_bounds = array<i64: 128, 128>}, {transform_indices = @transform_1, window_bounds = array<i64: 128, 128>}, {transform_indices = @transform_2, window_bounds = array<i64: 128, 128>}, {transform_indices = @transform_3, window_bounds = array<i64: 128, 128>}]} {
    %c0_i32 = arith.constant 0 : i32
    %0 = arith.cmpi eq, %arg2, %c0_i32 : i32
    %1 = arith.extui %0 : i1 to i32
    %c0_i32_0 = arith.constant 0 : i32
    %2 = arith.cmpi ne, %1, %c0_i32_0 : i32
    scf.if %2 {
      %cst_10 = arith.constant 0.000000e+00 : f32
      %12 = vector.broadcast %cst_10 : f32 to vector<128x128xf32>
      %c0_11 = arith.constant 0 : index
      %c0_12 = arith.constant 0 : index
      %13 = vector.load %arg7[%c0_11, %c0_12] : memref<128x128xf32, #tpu.memory_space<vmem>>, vector<128x128xf32>
      tpu.vector_store %arg7[%c0_11, %c0_12], %12 {strides = array<i32>} : memref<128x128xf32, #tpu.memory_space<vmem>>, vector<128x128xf32>,
    } else {
    }
    %c0 = arith.constant 0 : index
    %c0_1 = arith.constant 0 : index
    %3 = vector.load %arg7[%c0, %c0_1] : memref<128x128xf32, #tpu.memory_space<vmem>>, vector<128x128xf32>
    %c0_2 = arith.constant 0 : index
    %c0_3 = arith.constant 0 : index
    %4 = vector.load %arg3[%c0_2, %c0_3] : memref<128x128xbf16, #tpu.memory_space<vmem>>, vector<128x128xbf16>
    %c0_4 = arith.constant 0 : index
    %c0_5 = arith.constant 0 : index
    %5 = vector.load %arg4[%c0_4, %c0_5] : memref<128x128xbf16, #tpu.memory_space<vmem>>, vector<128x128xbf16>
    %cst = arith.constant dense<0.000000e+00> : vector<128x128xf32>
    %6 = tpu.matmul %4, %5, %cst {dimension_numbers = #tpu.dot_dimension_numbers<[1], [0], [0], [1], [0, 0, 1, 1], [], []>} : vector<128x128xbf16>, vector<128x128xbf16>, vector<128x128xf32> -> vector<128x128xf32>
    %7 = arith.addf %3, %6 : vector<128x128xf32>
    %c0_6 = arith.constant 0 : index
    %c0_7 = arith.constant 0 : index
    %8 = vector.load %arg7[%c0_6, %c0_7] : memref<128x128xf32, #tpu.memory_space<vmem>>, vector<128x128xf32>
    tpu.vector_store %arg7[%c0_6, %c0_7], %7 {strides = array<i32>} : memref<128x128xf32, #tpu.memory_space<vmem>>, vector<128x128xf32>,
    %c0_i32_8 = arith.constant 0 : i32
    %9 = arith.cmpi eq, %arg2, %c0_i32_8 : i32
    %10 = arith.extui %9 : i1 to i32
    %c0_i32_9 = arith.constant 0 : i32
    %11 = arith.cmpi ne, %10, %c0_i32_9 : i32
    scf.if %11 {
      %c0_10 = arith.constant 0 : index
      %c0_11 = arith.constant 0 : index
      %12 = vector.load %arg7[%c0_10, %c0_11] : memref<128x128xf32, #tpu.memory_space<vmem>>, vector<128x128xf32>
      %c0_12 = arith.constant 0 : index
      %c0_13 = arith.constant 0 : index
      %13 = vector.load %arg5[%c0_12, %c0_13] : memref<128x128xf32, #tpu.memory_space<vmem>>, vector<128x128xf32>
      %14 = arith.addf %12, %13 : vector<128x128xf32>
      %c0_14 = arith.constant 0 : index
      %c0_15 = arith.constant 0 : index
      %15 = vector.load %arg6[%c0_14, %c0_15] : memref<128x128xf32, #tpu.memory_space<vmem>>, vector<128x128xf32>
      tpu.vector_store %arg6[%c0_14, %c0_15], %14 {strides = array<i32>} : memref<128x128xf32, #tpu.memory_space<vmem>>, vector<128x128xf32>,
    } else {
    }
    return
  }
  func.func @transform_0(%arg0: i32, %arg1: i32, %arg2: i32) -> (i32, i32) {
    %c0_i32 = arith.constant 0 : i32
    return %arg0, %arg2 : i32, i32
  }
  func.func @transform_1(%arg0: i32, %arg1: i32, %arg2: i32) -> (i32, i32) {
    %c0_i32 = arith.constant 0 : i32
    return %arg2, %arg1 : i32, i32
  }
  func.func @transform_2(%arg0: i32, %arg1: i32, %arg2: i32) -> (i32, i32) {
    %c0_i32 = arith.constant 0 : i32
    return %arg0, %arg1 : i32, i32
  }
  func.func @transform_3(%arg0: i32, %arg1: i32, %arg2: i32) -> (i32, i32) {
    %c0_i32 = arith.constant 0 : i32
    return %arg0, %arg1 : i32, i32
  }
}

module attributes {stable_mosaic.version = 11 : i64} {
  func.func @_rgc_row_kernel(%arg0: i32, %arg1: i32, %arg2: i32, %arg3: memref<128x128xbf16, #tpu.memory_space<vmem>>, %arg4: memref<128x128xbf16, #tpu.memory_space<vmem>>, %arg5: memref<128x128xf32, #tpu.memory_space<vmem>>, %arg6: memref<128x128xbf16, #tpu.memory_space<vmem>>, %arg7: memref<128x128xf32, #tpu.memory_space<vmem>>, %arg8: memref<128x128xf32, #tpu.memory_space<vmem>>) attributes {dimension_semantics = [#tpu.dimension_semantics<parallel>, #tpu.dimension_semantics<parallel>, #tpu.dimension_semantics<arbitrary>], iteration_bounds = array<i64: 1, 1, 1>, scalar_prefetch = 0 : i64, scratch_operands = 1 : i64, tpu.core_type = #tpu.core_type<tc>, window_params = [{transform_indices = @transform_0, window_bounds = array<i64: 128, 128>}, {transform_indices = @transform_1, window_bounds = array<i64: 128, 128>}, {transform_indices = @transform_2, window_bounds = array<i64: 128, 128>}, {transform_indices = @transform_3, window_bounds = array<i64: 128, 128>}, {transform_indices = @transform_4, window_bounds = array<i64: 128, 128>}]} {
    %c0_i32 = arith.constant 0 : i32
    %0 = arith.cmpi eq, %arg2, %c0_i32 : i32
    %1 = arith.extui %0 : i1 to i32
    %c0_i32_0 = arith.constant 0 : i32
    %2 = arith.cmpi ne, %1, %c0_i32_0 : i32
    scf.if %2 {
      %cst_10 = arith.constant 0.000000e+00 : f32
      %12 = vector.broadcast %cst_10 : f32 to vector<128x128xf32>
      %c0_11 = arith.constant 0 : index
      %c0_12 = arith.constant 0 : index
      %13 = vector.load %arg8[%c0_11, %c0_12] : memref<128x128xf32, #tpu.memory_space<vmem>>, vector<128x128xf32>
      tpu.vector_store %arg8[%c0_11, %c0_12], %12 {strides = array<i32>} : memref<128x128xf32, #tpu.memory_space<vmem>>, vector<128x128xf32>,
    } else {
    }
    %c0 = arith.constant 0 : index
    %c0_1 = arith.constant 0 : index
    %3 = vector.load %arg8[%c0, %c0_1] : memref<128x128xf32, #tpu.memory_space<vmem>>, vector<128x128xf32>
    %c0_2 = arith.constant 0 : index
    %c0_3 = arith.constant 0 : index
    %4 = vector.load %arg3[%c0_2, %c0_3] : memref<128x128xbf16, #tpu.memory_space<vmem>>, vector<128x128xbf16>
    %c0_4 = arith.constant 0 : index
    %c0_5 = arith.constant 0 : index
    %5 = vector.load %arg4[%c0_4, %c0_5] : memref<128x128xbf16, #tpu.memory_space<vmem>>, vector<128x128xbf16>
    %cst = arith.constant dense<0.000000e+00> : vector<128x128xf32>
    %6 = tpu.matmul %4, %5, %cst {dimension_numbers = #tpu.dot_dimension_numbers<[1], [0], [0], [1], [0, 0, 1, 1], [], []>} : vector<128x128xbf16>, vector<128x128xbf16>, vector<128x128xf32> -> vector<128x128xf32>
    %7 = arith.addf %3, %6 : vector<128x128xf32>
    %c0_6 = arith.constant 0 : index
    %c0_7 = arith.constant 0 : index
    %8 = vector.load %arg8[%c0_6, %c0_7] : memref<128x128xf32, #tpu.memory_space<vmem>>, vector<128x128xf32>
    tpu.vector_store %arg8[%c0_6, %c0_7], %7 {strides = array<i32>} : memref<128x128xf32, #tpu.memory_space<vmem>>, vector<128x128xf32>,
    %c0_i32_8 = arith.constant 0 : i32
    %9 = arith.cmpi eq, %arg2, %c0_i32_8 : i32
    %10 = arith.extui %9 : i1 to i32
    %c0_i32_9 = arith.constant 0 : i32
    %11 = arith.cmpi ne, %10, %c0_i32_9 : i32
    scf.if %11 {
      %c0_10 = arith.constant 0 : index
      %c0_11 = arith.constant 0 : index
      %12 = vector.load %arg8[%c0_10, %c0_11] : memref<128x128xf32, #tpu.memory_space<vmem>>, vector<128x128xf32>
      %13 = arith.truncf %12 : vector<128x128xf32> to vector<128x128xbf16>
      %c0_12 = arith.constant 0 : index
      %c0_13 = arith.constant 0 : index
      %14 = vector.load %arg6[%c0_12, %c0_13] : memref<128x128xbf16, #tpu.memory_space<vmem>>, vector<128x128xbf16>
      tpu.vector_store %arg6[%c0_12, %c0_13], %13 {strides = array<i32>} : memref<128x128xbf16, #tpu.memory_space<vmem>>, vector<128x128xbf16>,
      %c0_14 = arith.constant 0 : index
      %c0_15 = arith.constant 0 : index
      %15 = vector.load %arg5[%c0_14, %c0_15] : memref<128x128xf32, #tpu.memory_space<vmem>>, vector<128x128xf32>
      %16 = arith.addf %15, %12 : vector<128x128xf32>
      %c0_16 = arith.constant 0 : index
      %c0_17 = arith.constant 0 : index
      %17 = vector.load %arg7[%c0_16, %c0_17] : memref<128x128xf32, #tpu.memory_space<vmem>>, vector<128x128xf32>
      tpu.vector_store %arg7[%c0_16, %c0_17], %16 {strides = array<i32>} : memref<128x128xf32, #tpu.memory_space<vmem>>, vector<128x128xf32>,
    } else {
    }
    return
  }
  func.func @transform_0(%arg0: i32, %arg1: i32, %arg2: i32) -> (i32, i32) {
    %c0_i32 = arith.constant 0 : i32
    return %arg0, %arg2 : i32, i32
  }
  func.func @transform_1(%arg0: i32, %arg1: i32, %arg2: i32) -> (i32, i32) {
    %c0_i32 = arith.constant 0 : i32
    return %arg2, %arg1 : i32, i32
  }
  func.func @transform_2(%arg0: i32, %arg1: i32, %arg2: i32) -> (i32, i32) {
    %c0_i32 = arith.constant 0 : i32
    return %arg0, %arg1 : i32, i32
  }
  func.func @transform_3(%arg0: i32, %arg1: i32, %arg2: i32) -> (i32, i32) {
    %c0_i32 = arith.constant 0 : i32
    return %arg0, %arg1 : i32, i32
  }
  func.func @transform_4(%arg0: i32, %arg1: i32, %arg2: i32) -> (i32, i32) {
    %c0_i32 = arith.constant 0 : i32
    return %arg0, %arg1 : i32, i32
  }
}

module attributes {stable_mosaic.version = 11 : i64} {
  func.func @_predict_kernel(%arg0: i32, %arg1: memref<8x32xf32, #tpu.memory_space<vmem>>, %arg2: memref<8x32xf32, #tpu.memory_space<vmem>>, %arg3: memref<1x32xf32, #tpu.memory_space<vmem>>, %arg4: memref<1x32xf32, #tpu.memory_space<vmem>>, %arg5: memref<1xf32, #tpu.memory_space<smem>>, %arg6: memref<8x1xf32, #tpu.memory_space<vmem>>) attributes {dimension_semantics = [#tpu.dimension_semantics<arbitrary>], iteration_bounds = array<i64: 1>, scalar_prefetch = 0 : i64, scratch_operands = 0 : i64, tpu.core_type = #tpu.core_type<tc>, window_params = [{pipeline_mode = #tpu.pipeline_mode<synchronous>, transform_indices = @transform_0, window_bounds = array<i64: 8, 32>}, {pipeline_mode = #tpu.pipeline_mode<synchronous>, transform_indices = @transform_1, window_bounds = array<i64: 8, 32>}, {pipeline_mode = #tpu.pipeline_mode<synchronous>, transform_indices = @transform_2, window_bounds = array<i64: 1, 32>}, {pipeline_mode = #tpu.pipeline_mode<synchronous>, transform_indices = @transform_3, window_bounds = array<i64: 1, 32>}, {transform_indices = @transform_4, window_bounds = array<i64: 1>}, {pipeline_mode = #tpu.pipeline_mode<synchronous>, transform_indices = @transform_5, window_bounds = array<i64: 8, 1>}]} {
    %c0 = arith.constant 0 : index
    %0 = memref.load %arg5[%c0] : memref<1xf32, #tpu.memory_space<smem>>
    %c0_0 = arith.constant 0 : index
    %c0_1 = arith.constant 0 : index
    %1 = vector.load %arg1[%c0_0, %c0_1] : memref<8x32xf32, #tpu.memory_space<vmem>>, vector<8x32xf32>
    %c0_2 = arith.constant 0 : index
    %c0_3 = arith.constant 0 : index
    %2 = vector.load %arg3[%c0_2, %c0_3] : memref<1x32xf32, #tpu.memory_space<vmem>>, vector<1x32xf32>
    %3 = vector.broadcast %2 : vector<1x32xf32> to vector<8x32xf32>
    %4 = arith.mulf %1, %3 : vector<8x32xf32>
    %cst = arith.constant dense<0.000000e+00> : vector<8xf32>
    %5 = vector.multi_reduction <add>, %4, %cst [1] : vector<8x32xf32> to vector<8xf32>
    %6 = vector.shape_cast %5 : vector<8xf32> to vector<8x1xf32>
    %c0_4 = arith.constant 0 : index
    %c0_5 = arith.constant 0 : index
    %7 = vector.load %arg2[%c0_4, %c0_5] : memref<8x32xf32, #tpu.memory_space<vmem>>, vector<8x32xf32>
    %c0_6 = arith.constant 0 : index
    %c0_7 = arith.constant 0 : index
    %8 = vector.load %arg4[%c0_6, %c0_7] : memref<1x32xf32, #tpu.memory_space<vmem>>, vector<1x32xf32>
    %9 = vector.broadcast %8 : vector<1x32xf32> to vector<8x32xf32>
    %10 = arith.mulf %7, %9 : vector<8x32xf32>
    %cst_8 = arith.constant dense<0.000000e+00> : vector<8xf32>
    %11 = vector.multi_reduction <add>, %10, %cst_8 [1] : vector<8x32xf32> to vector<8xf32>
    %12 = vector.shape_cast %11 : vector<8xf32> to vector<8x1xf32>
    %13 = arith.addf %6, %12 : vector<8x1xf32>
    %14 = vector.broadcast %0 : f32 to vector<8x1xf32>
    %15 = arith.addf %13, %14 : vector<8x1xf32>
    %16 = arith.negf %15 : vector<8x1xf32>
    %17 = math.exp %16 : vector<8x1xf32>
    %cst_9 = arith.constant 1.000000e+00 : f32
    %18 = vector.broadcast %cst_9 : f32 to vector<8x1xf32>
    %19 = arith.addf %18, %17 : vector<8x1xf32>
    %20 = arith.divf %18, %19 : vector<8x1xf32>
    %c0_10 = arith.constant 0 : index
    %c0_11 = arith.constant 0 : index
    %21 = vector.load %arg6[%c0_10, %c0_11] : memref<8x1xf32, #tpu.memory_space<vmem>>, vector<8x1xf32>
    tpu.vector_store %arg6[%c0_10, %c0_11], %20 {strides = array<i32>} : memref<8x1xf32, #tpu.memory_space<vmem>>, vector<8x1xf32>,
    return
  }
  func.func @transform_0(%arg0: i32) -> (i32, i32) {
    %c0_i32 = arith.constant 0 : i32
    %c0_i32_0 = arith.constant 0 : i32
    %c0_i32_1 = arith.constant 0 : i32
    return %c0_i32, %c0_i32_0 : i32, i32
  }
  func.func @transform_1(%arg0: i32) -> (i32, i32) {
    %c0_i32 = arith.constant 0 : i32
    %c0_i32_0 = arith.constant 0 : i32
    %c0_i32_1 = arith.constant 0 : i32
    return %c0_i32, %c0_i32_0 : i32, i32
  }
  func.func @transform_2(%arg0: i32) -> (i32, i32) {
    %c0_i32 = arith.constant 0 : i32
    %c0_i32_0 = arith.constant 0 : i32
    %c0_i32_1 = arith.constant 0 : i32
    return %c0_i32, %c0_i32_0 : i32, i32
  }
  func.func @transform_3(%arg0: i32) -> (i32, i32) {
    %c0_i32 = arith.constant 0 : i32
    %c0_i32_0 = arith.constant 0 : i32
    %c0_i32_1 = arith.constant 0 : i32
    return %c0_i32, %c0_i32_0 : i32, i32
  }
  func.func @transform_4(%arg0: i32) -> i32 {
    %c0_i32 = arith.constant 0 : i32
    %c0_i32_0 = arith.constant 0 : i32
    return %c0_i32 : i32
  }
  func.func @transform_5(%arg0: i32) -> (i32, i32) {
    %c0_i32 = arith.constant 0 : i32
    %c0_i32_0 = arith.constant 0 : i32
    %c0_i32_1 = arith.constant 0 : i32
    return %c0_i32, %c0_i32_0 : i32, i32
  }
}

</mosaic_0001>

<bundles_post_ra>
// kernel: orcdf_forward.10
= control target key start
LH: loop header
LB: loop body
LE: loop exit
PB: predicated region body
PF: predicated region fallthrough
CT: control target
= control target key end

     0   :  { %s639_s1 = inlined_call_operand.vmem [shape: bf16[128,128], index: 1, kind: input, shape index: {}]   ;;  %s640_s0 = inlined_call_operand.vmem [shape: bf16[128,128], index: 0, kind: input, shape index: {}]   ;;  %s641_s2 = inlined_call_operand.vmem [shape: f32[128,128], index: 2, kind: input, shape index: {}]   ;;  %s642_s3 = inlined_call_operand.vmem [shape: f32[128,128], index: 3, kind: output, shape index: {}]  }
   0x1   :  { %v459_v0 = vld [vmem:[%s639_s1] sm:$0xff]   ;;  %v460_v1 = vld [vmem:[%s639_s1 + $0x8] sm:$0xff]   ;;  %v461_v2 = vld [vmem:[%s639_s1 + $0x10] sm:$0xff]  }
   0x2   :  { %411 = vmatprep.subr.bf16.mxu0 %v459_v0  ;;  %443 = vmatprep.subr.bf16.mxu1 %v459_v0  ;;  %v462_v3 = vld [vmem:[%s639_s1 + $0x18] sm:$0xff]   ;;  %v467_v4 = vld [vmem:[%s640_s0] sm:$0xff]   ;;  %v464_v7 = vld [vmem:[%s639_s1 + $0x28] sm:$0xff]  }
   0x3   :  { %412 = vmatpush3.bf16.msra.mxu0 %v459_v0  ;;  %451 = vmatpush3.bf16.msra.mxu1 %v459_v0  ;;  %v468_v5 = vld [vmem:[%s640_s0 + $0x20] sm:$0xff]   ;;  %v465_v8 = vld [vmem:[%s639_s1 + $0x30] sm:$0xff]   ;;  %v466_v9 = vld [vmem:[%s639_s1 + $0x38] sm:$0xff]  }
   0x4   :  { %413 = vmatprep.subr.bf16.mxu0 %v460_v1  ;;  %444 = vmatprep.subr.bf16.mxu1 %v460_v1  ;;  %v463_v6 = vld [vmem:[%s639_s1 + $0x20] sm:$0xff]   ;;  %v469_v10 = vld [vmem:[%s640_s0 + $0x8] sm:$0xff]   ;;  %v471_v12 = vld [vmem:[%s640_s0 + $0x10] sm:$0xff]  }
   0x5   :  { %427 = vmatprep.mubr.bf16.mxu0 %v467_v4  ;;  %435 = vmatprep.mubr.bf16.mxu1 %v468_v5  ;;  %v470_v11 = vld [vmem:[%s640_s0 + $0x28] sm:$0xff]   ;;  %v472_v13 = vld [vmem:[%s640_s0 + $0x30] sm:$0xff]   ;;  %v473_v14 = vld [vmem:[%s640_s0 + $0x18] sm:$0xff]  }
   0x6   :  { %v474_v15 = vld [vmem:[%s640_s0 + $0x38] sm:$0xff]   ;;  %v329_v16 = vld [vmem:[%s641_s2 + $0x10] sm:$0xff]  ;;  %v327_v18 = vld [vmem:[%s641_s2] sm:$0xff] }
   0x7   :  { %414 = vmatpush3.bf16.msra.mxu0 %v460_v1  ;;  %452 = vmatpush3.bf16.msra.mxu1 %v460_v1  ;;  %v337_v17 = vld [vmem:[%s641_s2 + $0x50] sm:$0xff]  ;;  %v335_v19 = vld [vmem:[%s641_s2 + $0x40] sm:$0xff]  ;;  %v330_v22 = vld [vmem:[%s641_s2 + $0x18] sm:$0xff] }
   0x8   :  { %415 = vmatprep.subr.bf16.mxu0 %v461_v2  ;;  %445 = vmatprep.subr.bf16.mxu1 %v461_v2  ;;  %v338_v23 = vld [vmem:[%s641_s2 + $0x58] sm:$0xff]  ;;  %v328_v28 = vld [vmem:[%s641_s2 + $0x8] sm:$0xff]  ;;  %v333_v40 = vld [vmem:[%s641_s2 + $0x30] sm:$0xff] }
   0x9   :  { %v336_v29 = vld [vmem:[%s641_s2 + $0x48] sm:$0xff]  ;;  %v341_v41 = vld [vmem:[%s641_s2 + $0x70] sm:$0xff]  ;;  %v331_v42 = vld [vmem:[%s641_s2 + $0x20] sm:$0xff] }
   0xa   :  { %v339_v43 = vld [vmem:[%s641_s2 + $0x60] sm:$0xff]  ;;  %v334_v46 = vld [vmem:[%s641_s2 + $0x38] sm:$0xff]  ;;  %v332_v52 = vld [vmem:[%s641_s2 + $0x28] sm:$0xff] }
   0xb   :  { %416 = vmatpush3.bf16.msra.mxu0 %v461_v2  ;;  %453 = vmatpush3.bf16.msra.mxu1 %v461_v2  ;;  %v342_v47 = vld [vmem:[%s641_s2 + $0x78] sm:$0xff]  ;;  %v340_v53 = vld [vmem:[%s641_s2 + $0x68] sm:$0xff] }
   0xc   :  { %417 = vmatprep.subr.bf16.mxu0 %v462_v3  ;;  %446 = vmatprep.subr.bf16.mxu1 %v462_v3 }
   0xf   :  { %418 = vmatpush3.bf16.msra.mxu0 %v462_v3  ;;  %454 = vmatpush3.bf16.msra.mxu1 %v462_v3 }
  0x10   :  { %419 = vmatprep.subr.bf16.mxu0 %v463_v6  ;;  %447 = vmatprep.subr.bf16.mxu1 %v463_v6 }
  0x13   :  { %420 = vmatpush3.bf16.msra.mxu0 %v463_v6  ;;  %455 = vmatpush3.bf16.msra.mxu1 %v463_v6 }
  0x14   :  { %421 = vmatprep.subr.bf16.mxu0 %v464_v7  ;;  %448 = vmatprep.subr.bf16.mxu1 %v464_v7 }
  0x17   :  { %422 = vmatpush3.bf16.msra.mxu0 %v464_v7  ;;  %456 = vmatpush3.bf16.msra.mxu1 %v464_v7 }
  0x18   :  { %423 = vmatprep.subr.bf16.mxu0 %v465_v8  ;;  %449 = vmatprep.subr.bf16.mxu1 %v465_v8 }
  0x1b   :  { %424 = vmatpush3.bf16.msra.mxu0 %v465_v8  ;;  %457 = vmatpush3.bf16.msra.mxu1 %v465_v8 }
  0x1c   :  { %425 = vmatprep.subr.bf16.mxu0 %v466_v9  ;;  %450 = vmatprep.subr.bf16.mxu1 %v466_v9 }
  0x1f   :  { %426 = vmatpush3.bf16.msra.mxu0 %v466_v9  ;;  %458 = vmatpush3.bf16.msra.mxu1 %v466_v9 }
  0x22   :  { %428 = vmatmul.mubr.bf16.vlgmr.msra.gmra.mrb[0].mxu0 %v469_v10  ;;  %436 = vmatmul.mubr.bf16.vlgmr.msra.gmra.mrb[0].mxu1 %v470_v11 }
  0x23   :  { %431 = vmatprep.mubr.bf16.mxu0 %v471_v12  ;;  %439 = vmatprep.mubr.bf16.mxu1 %v472_v13 }
  0x2a   :  { %432 = vmatmul.mubr.bf16.gmra.mrb[4].mxu0 %v473_v14  ;;  %440 = vmatmul.mubr.bf16.gmra.mrb[4].mxu1 %v474_v15 }
  0xf5   :  { %v429_v20 = vpop.f32.mrb[0].mxu0  ;;  %v437_v21 = vpop.f32.mrb[0].mxu1 }
  0xf6   :  { %v345_v24 = vadd.f32 %v429_v20, %v329_v16  ;;  %v353_v25 = vadd.f32 %v437_v21, %v337_v17  ;;  %v213_v26 = vpop.f32.mrb[1].mxu0  ;;  %v245_v27 = vpop.f32.mrb[1].mxu1 }
  0xf7   :  { %v343_v30 = vadd.f32 %v327_v18, %v213_v26  ;;  %v351_v31 = vadd.f32 %v335_v19, %v245_v27  ;;  %v430_v32 = vpop.f32.mrb[2].mxu0  ;;  %v438_v33 = vpop.f32.mrb[2].mxu1 }
  0xf8   :  { %361 = vst [vmem:[%s642_s3 + $0x10] sm:$0xff] %v345_v24  ;;  %369 = vst [vmem:[%s642_s3 + $0x50] sm:$0xff] %v353_v25  ;;  %v346_v34 = vadd.f32 %v430_v32, %v330_v22  ;;  %v354_v35 = vadd.f32 %v438_v33, %v338_v23  ;;  %v216_v36 = vpop.f32.mrb[3].mxu0  ;;  %v248_v37 = vpop.f32.mrb[3].mxu1 }
  0xf9   :  { %359 = vst [vmem:[%s642_s3] sm:$0xff] %v343_v30  ;;  %367 = vst [vmem:[%s642_s3 + $0x40] sm:$0xff] %v351_v31  ;;  %v344_v38 = vadd.f32 %v328_v28, %v216_v36  ;;  %v352_v39 = vadd.f32 %v336_v29, %v248_v37 }
  0xfa   :  { %362 = vst [vmem:[%s642_s3 + $0x18] sm:$0xff] %v346_v34  ;;  %370 = vst [vmem:[%s642_s3 + $0x58] sm:$0xff] %v354_v35 }
  0xfb   :  { %360 = vst [vmem:[%s642_s3 + $0x8] sm:$0xff] %v344_v38  ;;  %368 = vst [vmem:[%s642_s3 + $0x48] sm:$0xff] %v352_v39 }
  0xfd   :  { %v433_v44 = vpop.f32.mrb[4].mxu0  ;;  %v441_v45 = vpop.f32.mrb[4].mxu1 }
  0xfe   :  { %v349_v48 = vadd.f32 %v433_v44, %v333_v40  ;;  %v357_v49 = vadd.f32 %v441_v45, %v341_v41  ;;  %v229_v50 = vpop.f32.mrb[5].mxu0  ;;  %v261_v51 = vpop.f32.mrb[5].mxu1 }
  0xff   :  { %v347_v54 = vadd.f32 %v331_v42, %v229_v50  ;;  %v355_v55 = vadd.f32 %v339_v43, %v261_v51  ;;  %v434_v56 = vpop.f32.mrb[6].mxu0  ;;  %v442_v57 = vpop.f32.mrb[6].mxu1 }
 0x100   :  { %365 = vst [vmem:[%s642_s3 + $0x30] sm:$0xff] %v349_v48  ;;  %373 = vst [vmem:[%s642_s3 + $0x70] sm:$0xff] %v357_v49  ;;  %v350_v58 = vadd.f32 %v434_v56, %v334_v46  ;;  %v358_v59 = vadd.f32 %v442_v57, %v342_v47  ;;  %v232_v60 = vpop.f32.mrb[7].mxu0  ;;  %v264_v61 = vpop.f32.mrb[7].mxu1 }
 0x101   :  { %363 = vst [vmem:[%s642_s3 + $0x20] sm:$0xff] %v347_v54  ;;  %371 = vst [vmem:[%s642_s3 + $0x60] sm:$0xff] %v355_v55  ;;  %v348_v62 = vadd.f32 %v332_v52, %v232_v60  ;;  %v356_v63 = vadd.f32 %v340_v53, %v264_v61 }
 0x102   :  { %366 = vst [vmem:[%s642_s3 + $0x38] sm:$0xff] %v350_v58  ;;  %374 = vst [vmem:[%s642_s3 + $0x78] sm:$0xff] %v358_v59 }
 0x103   :  { %364 = vst [vmem:[%s642_s3 + $0x28] sm:$0xff] %v348_v62  ;;  %372 = vst [vmem:[%s642_s3 + $0x68] sm:$0xff] %v356_v63 }

// kernel: orcdf_forward.6
= control target key start
LH: loop header
LB: loop body
LE: loop exit
PB: predicated region body
PF: predicated region fallthrough
CT: control target
= control target key end

     0   :  { %s833_s1 = inlined_call_operand.vmem [shape: bf16[128,128], index: 1, kind: input, shape index: {}]   ;;  %s834_s0 = inlined_call_operand.vmem [shape: bf16[128,128], index: 0, kind: input, shape index: {}]   ;;  %s835_s2 = inlined_call_operand.vmem [shape: f32[128,128], index: 2, kind: input, shape index: {}]   ;;  %s836_s4 = inlined_call_operand.vmem [shape: f32[128,128], index: 4, kind: output, shape index: {1}]   ;;  %s837_s3 = inlined_call_operand.vmem [shape: bf16[128,128], index: 3, kind: output, shape index: {0}]  }
   0x1   :  { %v624_v0 = vld [vmem:[%s833_s1] sm:$0xff]   ;;  %v625_v1 = vld [vmem:[%s833_s1 + $0x8] sm:$0xff]   ;;  %v626_v2 = vld [vmem:[%s833_s1 + $0x10] sm:$0xff]  }
   0x2   :  { %576 = vmatprep.subr.bf16.mxu0 %v624_v0  ;;  %608 = vmatprep.subr.bf16.mxu1 %v624_v0  ;;  %v627_v3 = vld [vmem:[%s833_s1 + $0x18] sm:$0xff]   ;;  %v632_v4 = vld [vmem:[%s834_s0] sm:$0xff]   ;;  %v629_v7 = vld [vmem:[%s833_s1 + $0x28] sm:$0xff]  }
   0x3   :  { %577 = vmatpush3.bf16.msra.mxu0 %v624_v0  ;;  %616 = vmatpush3.bf16.msra.mxu1 %v624_v0  ;;  %v633_v5 = vld [vmem:[%s834_s0 + $0x20] sm:$0xff]   ;;  %v630_v8 = vld [vmem:[%s833_s1 + $0x30] sm:$0xff]   ;;  %v631_v9 = vld [vmem:[%s833_s1 + $0x38] sm:$0xff]  }
   0x4   :  { %578 = vmatprep.subr.bf16.mxu0 %v625_v1  ;;  %609 = vmatprep.subr.bf16.mxu1 %v625_v1  ;;  %v628_v6 = vld [vmem:[%s833_s1 + $0x20] sm:$0xff]   ;;  %v634_v10 = vld [vmem:[%s834_s0 + $0x8] sm:$0xff]   ;;  %v636_v12 = vld [vmem:[%s834_s0 + $0x10] sm:$0xff]  }
   0x5   :  { %592 = vmatprep.mubr.bf16.mxu0 %v632_v4  ;;  %600 = vmatprep.mubr.bf16.mxu1 %v633_v5  ;;  %v635_v11 = vld [vmem:[%s834_s0 + $0x28] sm:$0xff]   ;;  %v637_v13 = vld [vmem:[%s834_s0 + $0x30] sm:$0xff]   ;;  %v638_v14 = vld [vmem:[%s834_s0 + $0x18] sm:$0xff]  }
   0x6   :  { %v639_v15 = vld [vmem:[%s834_s0 + $0x38] sm:$0xff]   ;;  %v411_v16 = vld [vmem:[%s835_s2 + $0x10] sm:$0xff]  ;;  %v409_v18 = vld [vmem:[%s835_s2] sm:$0xff] }
   0x7   :  { %579 = vmatpush3.bf16.msra.mxu0 %v625_v1  ;;  %617 = vmatpush3.bf16.msra.mxu1 %v625_v1  ;;  %v419_v17 = vld [vmem:[%s835_s2 + $0x50] sm:$0xff]  ;;  %v417_v19 = vld [vmem:[%s835_s2 + $0x40] sm:$0xff]  ;;  %v412_v22 = vld [vmem:[%s835_s2 + $0x18] sm:$0xff] }
   0x8   :  { %580 = vmatprep.subr.bf16.mxu0 %v626_v2  ;;  %610 = vmatprep.subr.bf16.mxu1 %v626_v2  ;;  %v420_v23 = vld [vmem:[%s835_s2 + $0x58] sm:$0xff]  ;;  %v410_v28 = vld [vmem:[%s835_s2 + $0x8] sm:$0xff]  ;;  %v415_v44 = vld [vmem:[%s835_s2 + $0x30] sm:$0xff] }
   0x9   :  { %v418_v29 = vld [vmem:[%s835_s2 + $0x48] sm:$0xff]  ;;  %v423_v45 = vld [vmem:[%s835_s2 + $0x70] sm:$0xff]  ;;  %v413_v46 = vld [vmem:[%s835_s2 + $0x20] sm:$0xff] }
   0xa   :  { %v421_v47 = vld [vmem:[%s835_s2 + $0x60] sm:$0xff]  ;;  %v416_v50 = vld [vmem:[%s835_s2 + $0x38] sm:$0xff]  ;;  %v414_v56 = vld [vmem:[%s835_s2 + $0x28] sm:$0xff] }
   0xb   :  { %581 = vmatpush3.bf16.msra.mxu0 %v626_v2  ;;  %618 = vmatpush3.bf16.msra.mxu1 %v626_v2  ;;  %v424_v51 = vld [vmem:[%s835_s2 + $0x78] sm:$0xff]  ;;  %v422_v57 = vld [vmem:[%s835_s2 + $0x68] sm:$0xff] }
   0xc   :  { %582 = vmatprep.subr.bf16.mxu0 %v627_v3  ;;  %611 = vmatprep.subr.bf16.mxu1 %v627_v3 }
   0xf   :  { %583 = vmatpush3.bf16.msra.mxu0 %v627_v3  ;;  %619 = vmatpush3.bf16.msra.mxu1 %v627_v3 }
  0x10   :  { %584 = vmatprep.subr.bf16.mxu0 %v628_v6  ;;  %612 = vmatprep.subr.bf16.mxu1 %v628_v6 }
  0x13   :  { %585 = vmatpush3.bf16.msra.mxu0 %v628_v6  ;;  %620 = vmatpush3.bf16.msra.mxu1 %v628_v6 }
  0x14   :  { %586 = vmatprep.subr.bf16.mxu0 %v629_v7  ;;  %613 = vmatprep.subr.bf16.mxu1 %v629_v7 }
  0x17   :  { %587 = vmatpush3.bf16.msra.mxu0 %v629_v7  ;;  %621 = vmatpush3.bf16.msra.mxu1 %v629_v7 }
  0x18   :  { %588 = vmatprep.subr.bf16.mxu0 %v630_v8  ;;  %614 = vmatprep.subr.bf16.mxu1 %v630_v8 }
  0x1b   :  { %589 = vmatpush3.bf16.msra.mxu0 %v630_v8  ;;  %622 = vmatpush3.bf16.msra.mxu1 %v630_v8 }
  0x1c   :  { %590 = vmatprep.subr.bf16.mxu0 %v631_v9  ;;  %615 = vmatprep.subr.bf16.mxu1 %v631_v9 }
  0x1f   :  { %591 = vmatpush3.bf16.msra.mxu0 %v631_v9  ;;  %623 = vmatpush3.bf16.msra.mxu1 %v631_v9 }
  0x22   :  { %593 = vmatmul.mubr.bf16.vlgmr.msra.gmra.mrb[0].mxu0 %v634_v10  ;;  %601 = vmatmul.mubr.bf16.vlgmr.msra.gmra.mrb[0].mxu1 %v635_v11 }
  0x23   :  { %596 = vmatprep.mubr.bf16.mxu0 %v636_v12  ;;  %604 = vmatprep.mubr.bf16.mxu1 %v637_v13 }
  0x2a   :  { %597 = vmatmul.mubr.bf16.gmra.mrb[4].mxu0 %v638_v14  ;;  %605 = vmatmul.mubr.bf16.gmra.mrb[4].mxu1 %v639_v15 }
  0xf5   :  { %v594_v20 = vpop.f32.mrb[0].mxu0  ;;  %v602_v21 = vpop.f32.mrb[0].mxu1 }
  0xf6   :  { %v427_v24 = vadd.f32 %v594_v20, %v411_v16  ;;  %v435_v25 = vadd.f32 %v602_v21, %v419_v17  ;;  %v215_v26 = vpop.f32.mrb[1].mxu0  ;;  %v247_v27 = vpop.f32.mrb[1].mxu1 }
  0xf7   :  { %v425_v30 = vadd.f32 %v409_v18, %v215_v26  ;;  %v433_v31 = vadd.f32 %v417_v19, %v247_v27  ;;  %v595_v32 = vpop.f32.mrb[2].mxu0  ;;  %v603_v33 = vpop.f32.mrb[2].mxu1 }
  0xf8   :  { %443 = vst [vmem:[%s836_s4 + $0x10] sm:$0xff] %v427_v24  ;;  %451 = vst [vmem:[%s836_s4 + $0x50] sm:$0xff] %v435_v25  ;;  %v521_v34 = vpack.c.bf16 %v595_v32, %v594_v20  ;;  %v428_v35 = vadd.f32 %v595_v32, %v412_v22  ;;  %v541_v36 = vpack.c.bf16 %v603_v33, %v602_v21  ;;  %v218_v38 = vpop.f32.mrb[3].mxu0  ;;  %v250_v39 = vpop.f32.mrb[3].mxu1 }
  0xf9   :  { %v436_v37 = vadd.f32 %v603_v33, %v420_v23  ;;  %441 = vst [vmem:[%s836_s4] sm:$0xff] %v425_v30  ;;  %449 = vst [vmem:[%s836_s4 + $0x40] sm:$0xff] %v433_v31  ;;  %v516_v40 = vpack.c.bf16 %v218_v38, %v215_v26  ;;  %v426_v41 = vadd.f32 %v410_v28, %v218_v38 }
  0xfa   :  { %v536_v42 = vpack.c.bf16 %v250_v39, %v247_v27  ;;  %v434_v43 = vadd.f32 %v418_v29, %v250_v39  ;;  %553 = vst [vmem:[%s837_s3 + $0x8] sm:$0xff] %v521_v34   ;;  %444 = vst [vmem:[%s836_s4 + $0x18] sm:$0xff] %v428_v35 }
  0xfb   :  { %557 = vst [vmem:[%s837_s3 + $0x28] sm:$0xff] %v541_v36   ;;  %452 = vst [vmem:[%s836_s4 + $0x58] sm:$0xff] %v436_v37 }
  0xfc   :  { %517 = vst [vmem:[%s837_s3] sm:$0xff] %v516_v40   ;;  %442 = vst [vmem:[%s836_s4 + $0x8] sm:$0xff] %v426_v41 }
  0xfd   :  { %556 = vst [vmem:[%s837_s3 + $0x20] sm:$0xff] %v536_v42   ;;  %450 = vst [vmem:[%s836_s4 + $0x48] sm:$0xff] %v434_v43  ;;  %v598_v48 = vpop.f32.mrb[4].mxu0  ;;  %v606_v49 = vpop.f32.mrb[4].mxu1 }
  0xfe   :  { %v431_v52 = vadd.f32 %v598_v48, %v415_v44  ;;  %v439_v53 = vadd.f32 %v606_v49, %v423_v45  ;;  %v231_v54 = vpop.f32.mrb[5].mxu0  ;;  %v263_v55 = vpop.f32.mrb[5].mxu1 }
  0xff   :  { %v429_v58 = vadd.f32 %v413_v46, %v231_v54  ;;  %v437_v59 = vadd.f32 %v421_v47, %v263_v55  ;;  %v599_v60 = vpop.f32.mrb[6].mxu0  ;;  %v607_v61 = vpop.f32.mrb[6].mxu1 }
 0x100   :  { %447 = vst [vmem:[%s836_s4 + $0x30] sm:$0xff] %v431_v52  ;;  %455 = vst [vmem:[%s836_s4 + $0x70] sm:$0xff] %v439_v53  ;;  %v531_v62 = vpack.c.bf16 %v599_v60, %v598_v48  ;;  %v432_v63 = vadd.f32 %v599_v60, %v416_v50  ;;  %v551_v0 = vpack.c.bf16 %v607_v61, %v606_v49  ;;  %v234_v2 = vpop.f32.mrb[7].mxu0  ;;  %v266_v3 = vpop.f32.mrb[7].mxu1 }
 0x101   :  { %v440_v1 = vadd.f32 %v607_v61, %v424_v51  ;;  %445 = vst [vmem:[%s836_s4 + $0x20] sm:$0xff] %v429_v58  ;;  %453 = vst [vmem:[%s836_s4 + $0x60] sm:$0xff] %v437_v59  ;;  %v526_v4 = vpack.c.bf16 %v234_v2, %v231_v54  ;;  %v430_v5 = vadd.f32 %v414_v56, %v234_v2 }
 0x102   :  { %v546_v6 = vpack.c.bf16 %v266_v3, %v263_v55  ;;  %v438_v7 = vadd.f32 %v422_v57, %v266_v3  ;;  %555 = vst [vmem:[%s837_s3 + $0x18] sm:$0xff] %v531_v62   ;;  %448 = vst [vmem:[%s836_s4 + $0x38] sm:$0xff] %v432_v63 }
 0x103   :  { %559 = vst [vmem:[%s837_s3 + $0x38] sm:$0xff] %v551_v0   ;;  %456 = vst [vmem:[%s836_s4 + $0x78] sm:$0xff] %v440_v1 }
 0x104   :  { %554 = vst [vmem:[%s837_s3 + $0x10] sm:$0xff] %v526_v4   ;;  %446 = vst [vmem:[%s836_s4 + $0x28] sm:$0xff] %v430_v5 }
 0x105   :  { %558 = vst [vmem:[%s837_s3 + $0x30] sm:$0xff] %v546_v6   ;;  %454 = vst [vmem:[%s836_s4 + $0x68] sm:$0xff] %v438_v7 }

// kernel: orcdf_forward.7
= control target key start
LH: loop header
LB: loop body
LE: loop exit
PB: predicated region body
PF: predicated region fallthrough
CT: control target
= control target key end

     0   :  { %s849_s0 = inlined_call_operand.vmem [shape: bf16[128,128], index: 0, kind: input, shape index: {}]   ;;  %s850_s1 = inlined_call_operand.vmem [shape: bf16[128,128], index: 1, kind: input, shape index: {}]   ;;  %s851_s2 = inlined_call_operand.vmem [shape: f32[128,128], index: 2, kind: input, shape index: {}]   ;;  %s852_s4 = inlined_call_operand.vmem [shape: f32[128,128], index: 4, kind: output, shape index: {1}]   ;;  %s853_s3 = inlined_call_operand.vmem [shape: bf16[128,128], index: 3, kind: output, shape index: {0}]  }
   0x1   :  { %v640_v0 = vld [vmem:[%s849_s0] sm:$0xff]   ;;  %v641_v1 = vld [vmem:[%s849_s0 + $0x8] sm:$0xff]   ;;  %v642_v2 = vld [vmem:[%s849_s0 + $0x10] sm:$0xff]  }
   0x2   :  { %133 = vxpose.xlu0.c.b16.start [1/8] %v640_v0, 128  ;;  %v648_v3 = vld [vmem:[%s850_s1] sm:$0xff]   ;;  %v649_v4 = vld [vmem:[%s850_s1 + $0x8] sm:$0xff]   ;;  %v643_v5 = vld [vmem:[%s849_s0 + $0x18] sm:$0xff]  }
   0x3   :  { %592 = vmatprep.subr.bf16.mxu0 %v648_v3  ;;  %624 = vmatprep.subr.bf16.mxu1 %v648_v3  ;;  %v650_v6 = vld [vmem:[%s850_s1 + $0x10] sm:$0xff]   ;;  %v644_v7 = vld [vmem:[%s849_s0 + $0x20] sm:$0xff]   ;;  %v651_v8 = vld [vmem:[%s850_s1 + $0x18] sm:$0xff]  }
   0x4   :  { %593 = vmatpush3.bf16.msra.mxu0 %v648_v3  ;;  %632 = vmatpush3.bf16.msra.mxu1 %v648_v3  ;;  %v645_v9 = vld [vmem:[%s849_s0 + $0x28] sm:$0xff]   ;;  %v652_v10 = vld [vmem:[%s850_s1 + $0x20] sm:$0xff]   ;;  %v646_v11 = vld [vmem:[%s849_s0 + $0x30] sm:$0xff]  }
   0x5   :  { %594 = vmatprep.subr.bf16.mxu0 %v649_v4  ;;  %625 = vmatprep.subr.bf16.mxu1 %v649_v4  ;;  %v653_v12 = vld [vmem:[%s850_s1 + $0x28] sm:$0xff]   ;;  %v647_v13 = vld [vmem:[%s849_s0 + $0x38] sm:$0xff]   ;;  %v654_v14 = vld [vmem:[%s850_s1 + $0x30] sm:$0xff]  }
   0x6   :  { %134 = vxpose.xlu0.c.b16.cont [2/8] %v641_v1, 128  ;;  %v655_v15 = vld [vmem:[%s850_s1 + $0x38] sm:$0xff]   ;;  %v427_v24 = vld [vmem:[%s851_s2 + $0x10] sm:$0xff]  ;;  %v425_v25 = vld [vmem:[%s851_s2] sm:$0xff] }
   0x7   :  { %v428_v27 = vld [vmem:[%s851_s2 + $0x18] sm:$0xff]  ;;  %v426_v30 = vld [vmem:[%s851_s2 + $0x8] sm:$0xff]  ;;  %v431_v38 = vld [vmem:[%s851_s2 + $0x30] sm:$0xff] }
   0x8   :  { %595 = vmatpush3.bf16.msra.mxu0 %v649_v4  ;;  %633 = vmatpush3.bf16.msra.mxu1 %v649_v4  ;;  %v429_v39 = vld [vmem:[%s851_s2 + $0x20] sm:$0xff]  ;;  %v432_v41 = vld [vmem:[%s851_s2 + $0x38] sm:$0xff]  ;;  %v430_v44 = vld [vmem:[%s851_s2 + $0x28] sm:$0xff] }
   0x9   :  { %596 = vmatprep.subr.bf16.mxu0 %v650_v6  ;;  %626 = vmatprep.subr.bf16.mxu1 %v650_v6  ;;  %v435_v52 = vld [vmem:[%s851_s2 + $0x50] sm:$0xff]  ;;  %v433_v53 = vld [vmem:[%s851_s2 + $0x40] sm:$0xff]  ;;  %v436_v55 = vld [vmem:[%s851_s2 + $0x58] sm:$0xff] }
   0xa   :  { %135 = vxpose.xlu0.c.b16.cont [3/8] %v642_v2, 128  ;;  %v434_v58 = vld [vmem:[%s851_s2 + $0x48] sm:$0xff]  ;;  %v439_v2 = vld [vmem:[%s851_s2 + $0x70] sm:$0xff]  ;;  %v437_v3 = vld [vmem:[%s851_s2 + $0x60] sm:$0xff] }
   0xc   :  { %597 = vmatpush3.bf16.msra.mxu0 %v650_v6  ;;  %634 = vmatpush3.bf16.msra.mxu1 %v650_v6 }
   0xd   :  { %598 = vmatprep.subr.bf16.mxu0 %v651_v8  ;;  %627 = vmatprep.subr.bf16.mxu1 %v651_v8 }
   0xe   :  { %136 = vxpose.xlu0.c.b16.cont [4/8] %v643_v5, 128  ;;  %v440_v5 = vld [vmem:[%s851_s2 + $0x78] sm:$0xff] }
  0x10   :  { %599 = vmatpush3.bf16.msra.mxu0 %v651_v8  ;;  %635 = vmatpush3.bf16.msra.mxu1 %v651_v8  ;;  %v438_v8 = vld [vmem:[%s851_s2 + $0x68] sm:$0xff] }
  0x11   :  { %600 = vmatprep.subr.bf16.mxu0 %v652_v10  ;;  %628 = vmatprep.subr.bf16.mxu1 %v652_v10 }
  0x12   :  { %137 = vxpose.xlu0.c.b16.cont [5/8] %v644_v7, 128 }
  0x14   :  { %601 = vmatpush3.bf16.msra.mxu0 %v652_v10  ;;  %636 = vmatpush3.bf16.msra.mxu1 %v652_v10 }
  0x15   :  { %602 = vmatprep.subr.bf16.mxu0 %v653_v12  ;;  %629 = vmatprep.subr.bf16.mxu1 %v653_v12 }
  0x16   :  { %138 = vxpose.xlu0.c.b16.cont [6/8] %v645_v9, 128 }
  0x18   :  { %603 = vmatpush3.bf16.msra.mxu0 %v653_v12  ;;  %637 = vmatpush3.bf16.msra.mxu1 %v653_v12 }
  0x19   :  { %604 = vmatprep.subr.bf16.mxu0 %v654_v14  ;;  %630 = vmatprep.subr.bf16.mxu1 %v654_v14 }
  0x1a   :  { %139 = vxpose.xlu0.c.b16.cont [7/8] %v646_v11, 128 }
  0x1c   :  { %605 = vmatpush3.bf16.msra.mxu0 %v654_v14  ;;  %638 = vmatpush3.bf16.msra.mxu1 %v654_v14 }
  0x1d   :  { %606 = vmatprep.subr.bf16.mxu0 %v655_v15  ;;  %631 = vmatprep.subr.bf16.mxu1 %v655_v15 }
  0x1e   :  { %140 = vxpose.xlu0.c.b16.end [8/8] %v647_v13, 128 }
  0x20   :  { %607 = vmatpush3.bf16.msra.mxu0 %v655_v15  ;;  %639 = vmatpush3.bf16.msra.mxu1 %v655_v15 }
  0x68   :  { %v141_v16 = vpop.trf.xlu0 }
  0x69   :  { %608 = vmatprep.mubr.bf16.mxu0 %v141_v16 }
  0x6c   :  { %v142_v17 = vpop.trf.xlu0 }
  0x6d   :  { %609 = vmatmul.mubr.bf16.vlgmr.msra.gmra.mrb[0].mxu0 %v142_v17 }
  0x70   :  { %v143_v18 = vpop.trf.xlu0 }
  0x71   :  { %612 = vmatprep.mubr.bf16.mxu0 %v143_v18 }
  0x74   :  { %v144_v19 = vpop.trf.xlu0 }
  0x75   :  { %613 = vmatmul.mubr.bf16.gmra.mrb[4].mxu0 %v144_v19 }
  0x78   :  { %v145_v20 = vpop.trf.xlu0 }
  0x79   :  { %616 = vmatprep.mubr.bf16.mxu1 %v145_v20 }
  0x7c   :  { %v146_v21 = vpop.trf.xlu0 }
  0x7d   :  { %617 = vmatmul.mubr.bf16.vlgmr.msra.gmra.mrb[0].mxu1 %v146_v21 }
  0x80   :  { %v147_v22 = vpop.trf.xlu0 }
  0x81   :  { %620 = vmatprep.mubr.bf16.mxu1 %v147_v22 }
  0x84   :  { %v148_v23 = vpop.trf.xlu0 }
  0x85   :  { %621 = vmatmul.mubr.bf16.gmra.mrb[4].mxu1 %v148_v23 }
 0x140   :  { %v610_v26 = vpop.f32.mrb[0].mxu0 }
 0x141   :  { %v443_v28 = vadd.f32 %v610_v26, %v427_v24  ;;  %v231_v29 = vpop.f32.mrb[1].mxu0 }
 0x142   :  { %v441_v31 = vadd.f32 %v425_v25, %v231_v29  ;;  %v611_v32 = vpop.f32.mrb[2].mxu0 }
 0x143   :  { %459 = vst [vmem:[%s852_s4 + $0x10] sm:$0xff] %v443_v28  ;;  %v537_v33 = vpack.c.bf16 %v611_v32, %v610_v26  ;;  %v444_v34 = vadd.f32 %v611_v32, %v428_v27  ;;  %v234_v35 = vpop.f32.mrb[3].mxu0 }
 0x144   :  { %457 = vst [vmem:[%s852_s4] sm:$0xff] %v441_v31  ;;  %v532_v36 = vpack.c.bf16 %v234_v35, %v231_v29  ;;  %v442_v37 = vadd.f32 %v426_v30, %v234_v35 }
 0x145   :  { %569 = vst [vmem:[%s853_s3 + $0x8] sm:$0xff] %v537_v33   ;;  %460 = vst [vmem:[%s852_s4 + $0x18] sm:$0xff] %v444_v34 }
 0x146   :  { %533 = vst [vmem:[%s853_s3] sm:$0xff] %v532_v36   ;;  %458 = vst [vmem:[%s852_s4 + $0x8] sm:$0xff] %v442_v37 }
 0x148   :  { %v614_v40 = vpop.f32.mrb[4].mxu0 }
 0x149   :  { %v447_v42 = vadd.f32 %v614_v40, %v431_v38  ;;  %v247_v43 = vpop.f32.mrb[5].mxu0 }
 0x14a   :  { %v445_v45 = vadd.f32 %v429_v39, %v247_v43  ;;  %v615_v46 = vpop.f32.mrb[6].mxu0 }
 0x14b   :  { %463 = vst [vmem:[%s852_s4 + $0x30] sm:$0xff] %v447_v42  ;;  %v547_v47 = vpack.c.bf16 %v615_v46, %v614_v40  ;;  %v448_v48 = vadd.f32 %v615_v46, %v432_v41  ;;  %v250_v49 = vpop.f32.mrb[7].mxu0 }
 0x14c   :  { %461 = vst [vmem:[%s852_s4 + $0x20] sm:$0xff] %v445_v45  ;;  %v542_v50 = vpack.c.bf16 %v250_v49, %v247_v43  ;;  %v446_v51 = vadd.f32 %v430_v44, %v250_v49 }
 0x14d   :  { %571 = vst [vmem:[%s853_s3 + $0x18] sm:$0xff] %v547_v47   ;;  %464 = vst [vmem:[%s852_s4 + $0x38] sm:$0xff] %v448_v48 }
 0x14e   :  { %570 = vst [vmem:[%s853_s3 + $0x10] sm:$0xff] %v542_v50   ;;  %462 = vst [vmem:[%s852_s4 + $0x28] sm:$0xff] %v446_v51 }
 0x150   :  { %v618_v54 = vpop.f32.mrb[0].mxu1 }
 0x151   :  { %v451_v56 = vadd.f32 %v618_v54, %v435_v52  ;;  %v263_v57 = vpop.f32.mrb[1].mxu1 }
 0x152   :  { %v449_v59 = vadd.f32 %v433_v53, %v263_v57  ;;  %v619_v60 = vpop.f32.mrb[2].mxu1 }
 0x153   :  { %467 = vst [vmem:[%s852_s4 + $0x50] sm:$0xff] %v451_v56  ;;  %v557_v61 = vpack.c.bf16 %v619_v60, %v618_v54  ;;  %v452_v62 = vadd.f32 %v619_v60, %v436_v55  ;;  %v266_v63 = vpop.f32.mrb[3].mxu1 }
 0x154   :  { %465 = vst [vmem:[%s852_s4 + $0x40] sm:$0xff] %v449_v59  ;;  %v552_v0 = vpack.c.bf16 %v266_v63, %v263_v57  ;;  %v450_v1 = vadd.f32 %v434_v58, %v266_v63 }
 0x155   :  { %573 = vst [vmem:[%s853_s3 + $0x28] sm:$0xff] %v557_v61   ;;  %468 = vst [vmem:[%s852_s4 + $0x58] sm:$0xff] %v452_v62 }
 0x156   :  { %572 = vst [vmem:[%s853_s3 + $0x20] sm:$0xff] %v552_v0   ;;  %466 = vst [vmem:[%s852_s4 + $0x48] sm:$0xff] %v450_v1 }
 0x158   :  { %v622_v4 = vpop.f32.mrb[4].mxu1 }
 0x159   :  { %v455_v6 = vadd.f32 %v622_v4, %v439_v2  ;;  %v279_v7 = vpop.f32.mrb[5].mxu1 }
 0x15a   :  { %v453_v9 = vadd.f32 %v437_v3, %v279_v7  ;;  %v623_v10 = vpop.f32.mrb[6].mxu1 }
 0x15b   :  { %471 = vst [vmem:[%s852_s4 + $0x70] sm:$0xff] %v455_v6  ;;  %v567_v11 = vpack.c.bf16 %v623_v10, %v622_v4  ;;  %v456_v12 = vadd.f32 %v623_v10, %v440_v5  ;;  %v282_v13 = vpop.f32.mrb[7].mxu1 }
 0x15c   :  { %469 = vst [vmem:[%s852_s4 + $0x60] sm:$0xff] %v453_v9  ;;  %v562_v14 = vpack.c.bf16 %v282_v13, %v279_v7  ;;  %v454_v15 = vadd.f32 %v438_v8, %v282_v13 }
 0x15d   :  { %575 = vst [vmem:[%s853_s3 + $0x38] sm:$0xff] %v567_v11   ;;  %472 = vst [vmem:[%s852_s4 + $0x78] sm:$0xff] %v456_v12 }
 0x15e   :  { %574 = vst [vmem:[%s853_s3 + $0x30] sm:$0xff] %v562_v14   ;;  %470 = vst [vmem:[%s852_s4 + $0x68] sm:$0xff] %v454_v15 }

// kernel: orcdf_forward.9
= control target key start
LH: loop header
LB: loop body
LE: loop exit
PB: predicated region body
PF: predicated region fallthrough
CT: control target
= control target key end

     0   :  { %s880_s0 = inlined_call_operand.vmem [shape: bf16[128,128], index: 0, kind: input, shape index: {}]   ;;  %s881_s1 = inlined_call_operand.vmem [shape: bf16[128,128], index: 1, kind: input, shape index: {}]   ;;  %s882_s2 = inlined_call_operand.vmem [shape: f32[128,128], index: 2, kind: input, shape index: {}]   ;;  %s883_s3 = inlined_call_operand.hbm [shape: bf16[128,128], index: 3, kind: output, shape index: {0}]   ;;  %s884_s4 = inlined_call_operand.vmem [shape: f32[128,128], index: 4, kind: output, shape index: {1}]  }
   0x1   :  { %v656_v0 = vld [vmem:[%s880_s0] sm:$0xff]   ;;  %v657_v1 = vld [vmem:[%s880_s0 + $0x8] sm:$0xff]   ;;  %v658_v2 = vld [vmem:[%s880_s0 + $0x10] sm:$0xff]  }
   0x2   :  { %134 = vxpose.xlu0.c.b16.start [1/8] %v656_v0, 128  ;;  %v664_v3 = vld [vmem:[%s881_s1] sm:$0xff]   ;;  %v665_v4 = vld [vmem:[%s881_s1 + $0x8] sm:$0xff]   ;;  %v659_v5 = vld [vmem:[%s880_s0 + $0x18] sm:$0xff]  }
   0x3   :  { %605 = vmatprep.subr.bf16.mxu0 %v664_v3  ;;  %637 = vmatprep.subr.bf16.mxu1 %v664_v3  ;;  %v666_v6 = vld [vmem:[%s881_s1 + $0x10] sm:$0xff]   ;;  %v660_v7 = vld [vmem:[%s880_s0 + $0x20] sm:$0xff]   ;;  %v667_v8 = vld [vmem:[%s881_s1 + $0x18] sm:$0xff]  }
   0x4   :  { %606 = vmatpush3.bf16.msra.mxu0 %v664_v3  ;;  %645 = vmatpush3.bf16.msra.mxu1 %v664_v3 }
   0x5   :  { %607 = vmatprep.subr.bf16.mxu0 %v665_v4  ;;  %638 = vmatprep.subr.bf16.mxu1 %v665_v4 }
   0x6   :  { %135 = vxpose.xlu0.c.b16.cont [2/8] %v657_v1, 128 }
   0x8   :  { %608 = vmatpush3.bf16.msra.mxu0 %v665_v4  ;;  %646 = vmatpush3.bf16.msra.mxu1 %v665_v4 }
   0x9   :  { %609 = vmatprep.subr.bf16.mxu0 %v666_v6 }
   0xa   :  { %136 = vxpose.xlu0.c.b16.cont [3/8] %v658_v2, 128 }
   0xe   :  { %137 = vxpose.xlu0.c.b16.cont [4/8] %v659_v5, 128 }
   0xf   :  { %10 = vsyncpa [#allocation4], 0  ;;  %639 = vmatprep.subr.bf16.mxu1 %v666_v6  ;;  %v661_v9 = vld [vmem:[%s880_s0 + $0x28] sm:$0xff]   ;;  %610 = vmatpush3.bf16.msra.mxu0 %v666_v6  ;;  %v668_v10 = vld [vmem:[%s881_s1 + $0x20] sm:$0xff]   ;;  %s696_s19 = smov [#allocation3]  }
  0x10   :  { %611 = vmatprep.subr.bf16.mxu0 %v667_v8  ;;  %647 = vmatpush3.bf16.msra.mxu1 %v666_v6  ;;  %v662_v11 = vld [vmem:[%s880_s0 + $0x30] sm:$0xff]   ;;  %v669_v12 = vld [vmem:[%s881_s1 + $0x28] sm:$0xff]   ;;  %v663_v13 = vld [vmem:[%s880_s0 + $0x38] sm:$0xff]   ;;  %s479_s20 = sshll.u32 %s696_s19, 4  ;;  %s480_s20 = int_to_ptr.vmem [resolvable:$true] %s479_s20 }
  0x11   :  { %640 = vmatprep.subr.bf16.mxu1 %v667_v8  ;;  %v670_v14 = vld [vmem:[%s881_s1 + $0x30] sm:$0xff]   ;;  %v671_v15 = vld [vmem:[%s881_s1 + $0x38] sm:$0xff]   ;;  %v426_v25 = vld [vmem:[%s882_s2] sm:$0xff]  ;;  %s672_s28 = scalar_lea.vmem %s480_s20, 1024  ;;  %p677_p1 = scmp.lt.s32.totalorder %s480_s20, %s480_s20 }
  0x12   :  { %138 = vxpose.xlu0.c.b16.cont [5/8] %v660_v7, 128  ;;  %v428_v24 = vld [vmem:[%s882_s2 + $0x10] sm:$0xff]  ;;  %v429_v27 = vld [vmem:[%s882_s2 + $0x18] sm:$0xff]  ;;  %v427_v30 = vld [vmem:[%s882_s2 + $0x8] sm:$0xff]  ;;  %p673_p0 = scmp.ne.s32.totalorder %s480_s20, %s672_s28  ;;  %p678_p2 = scmp.lt.s32.totalorder %s672_s28, %s672_s28 }
  0x13   :  { %612 = vmatpush3.bf16.msra.mxu0 %v667_v8  ;;  %v432_v38 = vld [vmem:[%s882_s2 + $0x30] sm:$0xff]  ;;  %v430_v39 = vld [vmem:[%s882_s2 + $0x20] sm:$0xff]  ;;  %v433_v41 = vld [vmem:[%s882_s2 + $0x38] sm:$0xff] }
  0x14   :  { %613 = vmatprep.subr.bf16.mxu0 %v668_v10  ;;  %648 = vmatpush3.bf16.msra.mxu1 %v667_v8  ;;  %v431_v44 = vld [vmem:[%s882_s2 + $0x28] sm:$0xff]  ;;  %v436_v52 = vld [vmem:[%s882_s2 + $0x50] sm:$0xff]  ;;  %v434_v53 = vld [vmem:[%s882_s2 + $0x40] sm:$0xff]  ;;  %p679_p3 = por %p678_p2, %p677_p1 }
  0x15   :  { %641 = vmatprep.subr.bf16.mxu1 %v668_v10  ;;  %v437_v55 = vld [vmem:[%s882_s2 + $0x58] sm:$0xff]  ;;  %v435_v58 = vld [vmem:[%s882_s2 + $0x48] sm:$0xff]  ;;  %v440_v2 = vld [vmem:[%s882_s2 + $0x70] sm:$0xff] }
  0x16   :  { %139 = vxpose.xlu0.c.b16.cont [6/8] %v661_v9, 128  ;;  %v438_v3 = vld [vmem:[%s882_s2 + $0x60] sm:$0xff]  ;;  %v441_v5 = vld [vmem:[%s882_s2 + $0x78] sm:$0xff]  ;;  %v439_v8 = vld [vmem:[%s882_s2 + $0x68] sm:$0xff]  ;;  %p680_p4 = pnand %p679_p3, %p673_p0 }
  0x17   :  { %614 = vmatpush3.bf16.msra.mxu0 %v668_v10 }
  0x18   :  { %615 = vmatprep.subr.bf16.mxu0 %v669_v12  ;;  %649 = vmatpush3.bf16.msra.mxu1 %v668_v10 }
  0x19   :  { %642 = vmatprep.subr.bf16.mxu1 %v669_v12 }
  0x1a   :  { %140 = vxpose.xlu0.c.b16.cont [7/8] %v662_v11, 128 }
  0x1b   :  { %616 = vmatpush3.bf16.msra.mxu0 %v669_v12 }
  0x1c   :  { %617 = vmatprep.subr.bf16.mxu0 %v670_v14  ;;  %650 = vmatpush3.bf16.msra.mxu1 %v669_v12 }
  0x1d   :  { %643 = vmatprep.subr.bf16.mxu1 %v670_v14 }
  0x1e   :  { %141 = vxpose.xlu0.c.b16.end [8/8] %v663_v13, 128 }
  0x1f   :  { %618 = vmatpush3.bf16.msra.mxu0 %v670_v14 }
  0x20   :  { %619 = vmatprep.subr.bf16.mxu0 %v671_v15  ;;  %651 = vmatpush3.bf16.msra.mxu1 %v670_v14 }
  0x21   :  { %644 = vmatprep.subr.bf16.mxu1 %v671_v15 }
  0x23   :  { %620 = vmatpush3.bf16.msra.mxu0 %v671_v15 }
  0x24   :  { %652 = vmatpush3.bf16.msra.mxu1 %v671_v15 }
  0x68   :  { %v142_v16 = vpop.trf.xlu0 }
  0x69   :  { %621 = vmatprep.mubr.bf16.mxu0 %v142_v16 }
  0x6c   :  { %v143_v17 = vpop.trf.xlu0 }
  0x6d   :  { %622 = vmatmul.mubr.bf16.vlgmr.msra.gmra.mrb[0].mxu0 %v143_v17 }
  0x70   :  { %v144_v18 = vpop.trf.xlu0 }
  0x71   :  { %625 = vmatprep.mubr.bf16.mxu0 %v144_v18 }
  0x74   :  { %v145_v19 = vpop.trf.xlu0 }
  0x75   :  { %626 = vmatmul.mubr.bf16.gmra.mrb[4].mxu0 %v145_v19 }
  0x78   :  { %v146_v20 = vpop.trf.xlu0 }
  0x79   :  { %629 = vmatprep.mubr.bf16.mxu1 %v146_v20 }
  0x7c   :  { %v147_v21 = vpop.trf.xlu0 }
  0x7d   :  { %630 = vmatmul.mubr.bf16.vlgmr.msra.gmra.mrb[0].mxu1 %v147_v21 }
  0x80   :  { %v148_v22 = vpop.trf.xlu0 }
  0x81   :  { %633 = vmatprep.mubr.bf16.mxu1 %v148_v22 }
  0x84   :  { %v149_v23 = vpop.trf.xlu0 }
  0x85   :  { %634 = vmatmul.mubr.bf16.gmra.mrb[4].mxu1 %v149_v23 }
 0x140   :  { %v623_v26 = vpop.f32.mrb[0].mxu0 }
 0x141   :  { %v444_v28 = vadd.f32 %v623_v26, %v428_v24  ;;  %v232_v29 = vpop.f32.mrb[1].mxu0 }
 0x142   :  { %v442_v31 = vadd.f32 %v426_v25, %v232_v29  ;;  %v624_v32 = vpop.f32.mrb[2].mxu0 }
 0x143   :  { %460 = vst [vmem:[%s884_s4 + $0x10] sm:$0xff] %v444_v28  ;;  %v550_v33 = vpack.c.bf16 %v624_v32, %v623_v26  ;;  %v445_v34 = vadd.f32 %v624_v32, %v429_v27  ;;  %v235_v35 = vpop.f32.mrb[3].mxu0 }
 0x144   :  { %458 = vst [vmem:[%s884_s4] sm:$0xff] %v442_v31  ;;  %v545_v36 = vpack.c.bf16 %v235_v35, %v232_v29  ;;  %v443_v37 = vadd.f32 %v427_v30, %v235_v35 }
 0x145   :  { %582 = vst [vmem:[#allocation3 + $0x8] sm:$0xff] %v550_v33   ;;  %461 = vst [vmem:[%s884_s4 + $0x18] sm:$0xff] %v445_v34 }
 0x146   :  { %546 = vst [vmem:[#allocation3] sm:$0xff] %v545_v36   ;;  %459 = vst [vmem:[%s884_s4 + $0x8] sm:$0xff] %v443_v37 }
 0x148   :  { %v627_v40 = vpop.f32.mrb[4].mxu0 }
 0x149   :  { %v448_v42 = vadd.f32 %v627_v40, %v432_v38  ;;  %v248_v43 = vpop.f32.mrb[5].mxu0 }
 0x14a   :  { %v446_v45 = vadd.f32 %v430_v39, %v248_v43  ;;  %v628_v46 = vpop.f32.mrb[6].mxu0 }
 0x14b   :  { %464 = vst [vmem:[%s884_s4 + $0x30] sm:$0xff] %v448_v42  ;;  %v560_v47 = vpack.c.bf16 %v628_v46, %v627_v40  ;;  %v449_v48 = vadd.f32 %v628_v46, %v433_v41  ;;  %v251_v49 = vpop.f32.mrb[7].mxu0 }
 0x14c   :  { %462 = vst [vmem:[%s884_s4 + $0x20] sm:$0xff] %v446_v45  ;;  %v555_v50 = vpack.c.bf16 %v251_v49, %v248_v43  ;;  %v447_v51 = vadd.f32 %v431_v44, %v251_v49 }
 0x14d   :  { %584 = vst [vmem:[#allocation3 + $0x18] sm:$0xff] %v560_v47   ;;  %465 = vst [vmem:[%s884_s4 + $0x38] sm:$0xff] %v449_v48 }
 0x14e   :  { %583 = vst [vmem:[#allocation3 + $0x10] sm:$0xff] %v555_v50   ;;  %463 = vst [vmem:[%s884_s4 + $0x28] sm:$0xff] %v447_v51 }
 0x150   :  { %v631_v54 = vpop.f32.mrb[0].mxu1 }
 0x151   :  { %v452_v56 = vadd.f32 %v631_v54, %v436_v52  ;;  %v264_v57 = vpop.f32.mrb[1].mxu1 }
 0x152   :  { %v450_v59 = vadd.f32 %v434_v53, %v264_v57  ;;  %v632_v60 = vpop.f32.mrb[2].mxu1 }
 0x153   :  { %468 = vst [vmem:[%s884_s4 + $0x50] sm:$0xff] %v452_v56  ;;  %v570_v61 = vpack.c.bf16 %v632_v60, %v631_v54  ;;  %v453_v62 = vadd.f32 %v632_v60, %v437_v55  ;;  %v267_v63 = vpop.f32.mrb[3].mxu1 }
 0x154   :  { %466 = vst [vmem:[%s884_s4 + $0x40] sm:$0xff] %v450_v59  ;;  %v565_v0 = vpack.c.bf16 %v267_v63, %v264_v57  ;;  %v451_v1 = vadd.f32 %v435_v58, %v267_v63 }
 0x155   :  { %586 = vst [vmem:[#allocation3 + $0x28] sm:$0xff] %v570_v61   ;;  %469 = vst [vmem:[%s884_s4 + $0x58] sm:$0xff] %v453_v62 }
 0x156   :  { %585 = vst [vmem:[#allocation3 + $0x20] sm:$0xff] %v565_v0   ;;  %467 = vst [vmem:[%s884_s4 + $0x48] sm:$0xff] %v451_v1 }
 0x158   :  { %v635_v4 = vpop.f32.mrb[4].mxu1 }
 0x159   :  { %v456_v6 = vadd.f32 %v635_v4, %v440_v2  ;;  %v280_v7 = vpop.f32.mrb[5].mxu1 }
 0x15a   :  { %v454_v9 = vadd.f32 %v438_v3, %v280_v7  ;;  %v636_v10 = vpop.f32.mrb[6].mxu1 }
 0x15b   :  { %472 = vst [vmem:[%s884_s4 + $0x70] sm:$0xff] %v456_v6  ;;  %v580_v11 = vpack.c.bf16 %v636_v10, %v635_v4  ;;  %v457_v12 = vadd.f32 %v636_v10, %v441_v5  ;;  %v283_v13 = vpop.f32.mrb[7].mxu1 }
 0x15c   :  { %470 = vst [vmem:[%s884_s4 + $0x60] sm:$0xff] %v454_v9  ;;  %v575_v14 = vpack.c.bf16 %v283_v13, %v280_v7  ;;  %v455_v15 = vadd.f32 %v439_v8, %v283_v13 }
 0x15d   :  { %588 = vst [vmem:[#allocation3 + $0x38] sm:$0xff] %v580_v11   ;;  %473 = vst [vmem:[%s884_s4 + $0x78] sm:$0xff] %v457_v12 }
 0x15e   :  { %587 = vst [vmem:[#allocation3 + $0x30] sm:$0xff] %v575_v14   ;;  %471 = vst [vmem:[%s884_s4 + $0x68] sm:$0xff] %v455_v15 }
 0x15f   :  { %683 = shalt.err (!%p680_p4)
}
 0x160   :  { %s684_s5 = scalar_lea.hbm %s883_s3, 1024 }
 0x161   :  { %p685_p5 = scmp.ne.s32.totalorder %s883_s3, %s684_s5  ;;  %p688_p6 = scmp.lt.u32.totalorder %s684_s5, %s883_s3 }
 0x163   :  { %p690_p7 = pnand %p688_p6, %p685_p5 }
 0x165   :  { %693 = shalt.err (!%p690_p7)
}
 0x166   :  { %s697_s4 = smov 64   ;;  %s698_s10 = smov 4  }
 0x167   :  { %485 = dma.vmem_to_hbm [thread:$0]  %s480_s20, 1024, %s883_s3, [#allocation4], %s697_s4, %s697_s4, %s698_s10  }
 0x168   :  { %694 = dma.done.wait [#allocation4], 1024  }
 0x169   :  { %695 = vsyncadd [#allocation4], 4294966272 }
 0x16a   :  { %493 = vsyncpa [#allocation4], 1 }

// kernel: orcdf_forward.8
= control target key start
LH: loop header
LB: loop body
LE: loop exit
PB: predicated region body
PF: predicated region fallthrough
CT: control target
= control target key end

     0   :  { %s871_s0 = inlined_call_operand.vmem [shape: bf16[128,128], index: 0, kind: input, shape index: {}]   ;;  %s872_s1 = inlined_call_operand.vmem [shape: bf16[128,128], index: 1, kind: input, shape index: {}]   ;;  %s873_s2 = inlined_call_operand.vmem [shape: f32[128,128], index: 2, kind: input, shape index: {}]   ;;  %s874_s3 = inlined_call_operand.hbm [shape: bf16[128,128], index: 3, kind: output, shape index: {0}]   ;;  %s875_s4 = inlined_call_operand.vmem [shape: f32[128,128], index: 4, kind: output, shape index: {1}]  }
   0x1   :  { %v640_v0 = vld [vmem:[%s872_s1] sm:$0xff]   ;;  %v641_v1 = vld [vmem:[%s872_s1 + $0x8] sm:$0xff]   ;;  %v642_v2 = vld [vmem:[%s872_s1 + $0x10] sm:$0xff]  }
   0x2   :  { %589 = vmatprep.subr.bf16.mxu0 %v640_v0  ;;  %621 = vmatprep.subr.bf16.mxu1 %v640_v0  ;;  %v643_v3 = vld [vmem:[%s872_s1 + $0x18] sm:$0xff]   ;;  %v648_v4 = vld [vmem:[%s871_s0] sm:$0xff]   ;;  %v645_v7 = vld [vmem:[%s872_s1 + $0x28] sm:$0xff]  }
   0x3   :  { %590 = vmatpush3.bf16.msra.mxu0 %v640_v0  ;;  %629 = vmatpush3.bf16.msra.mxu1 %v640_v0  ;;  %v649_v5 = vld [vmem:[%s871_s0 + $0x20] sm:$0xff]  }
   0x4   :  { %591 = vmatprep.subr.bf16.mxu0 %v641_v1  ;;  %622 = vmatprep.subr.bf16.mxu1 %v641_v1  ;;  %v644_v6 = vld [vmem:[%s872_s1 + $0x20] sm:$0xff]  }
   0x5   :  { %605 = vmatprep.mubr.bf16.mxu0 %v648_v4  ;;  %613 = vmatprep.mubr.bf16.mxu1 %v649_v5 }
   0x7   :  { %592 = vmatpush3.bf16.msra.mxu0 %v641_v1  ;;  %630 = vmatpush3.bf16.msra.mxu1 %v641_v1 }
   0x8   :  { %593 = vmatprep.subr.bf16.mxu0 %v642_v2  ;;  %623 = vmatprep.subr.bf16.mxu1 %v642_v2 }
   0xb   :  { %594 = vmatpush3.bf16.msra.mxu0 %v642_v2  ;;  %631 = vmatpush3.bf16.msra.mxu1 %v642_v2 }
   0xc   :  { %595 = vmatprep.subr.bf16.mxu0 %v643_v3  ;;  %624 = vmatprep.subr.bf16.mxu1 %v643_v3 }
   0xf   :  { %596 = vmatpush3.bf16.msra.mxu0 %v643_v3  ;;  %632 = vmatpush3.bf16.msra.mxu1 %v643_v3 }
  0x10   :  { %597 = vmatprep.subr.bf16.mxu0 %v644_v6  ;;  %625 = vmatprep.subr.bf16.mxu1 %v644_v6 }
  0x11   :  { %10 = vsyncpa [#allocation4], 0  ;;  %v646_v8 = vld [vmem:[%s872_s1 + $0x30] sm:$0xff]   ;;  %v647_v9 = vld [vmem:[%s872_s1 + $0x38] sm:$0xff]   ;;  %s680_s9 = smov [#allocation3]  }
  0x12   :  { %v650_v10 = vld [vmem:[%s871_s0 + $0x8] sm:$0xff]   ;;  %v652_v12 = vld [vmem:[%s871_s0 + $0x10] sm:$0xff]   ;;  %v654_v14 = vld [vmem:[%s871_s0 + $0x18] sm:$0xff]   ;;  %s463_s10 = sshll.u32 %s680_s9, 4  ;;  %s834_s10 = int_to_ptr.vmem [resolvable:$true] %s463_s10 }
  0x13   :  { %598 = vmatpush3.bf16.msra.mxu0 %v644_v6  ;;  %633 = vmatpush3.bf16.msra.mxu1 %v644_v6  ;;  %v651_v11 = vld [vmem:[%s871_s0 + $0x28] sm:$0xff]   ;;  %v653_v13 = vld [vmem:[%s871_s0 + $0x30] sm:$0xff]   ;;  %v655_v15 = vld [vmem:[%s871_s0 + $0x38] sm:$0xff]   ;;  %s656_s28 = scalar_lea.vmem %s834_s10, 1024  ;;  %p661_p1 = scmp.lt.s32.totalorder %s834_s10, %s834_s10 }
  0x14   :  { %599 = vmatprep.subr.bf16.mxu0 %v645_v7  ;;  %626 = vmatprep.subr.bf16.mxu1 %v645_v7  ;;  %v412_v16 = vld [vmem:[%s873_s2 + $0x10] sm:$0xff]  ;;  %v410_v18 = vld [vmem:[%s873_s2] sm:$0xff]  ;;  %v413_v22 = vld [vmem:[%s873_s2 + $0x18] sm:$0xff]  ;;  %p657_p0 = scmp.ne.s32.totalorder %s834_s10, %s656_s28  ;;  %p662_p2 = scmp.lt.s32.totalorder %s656_s28, %s656_s28 }
  0x15   :  { %v420_v17 = vld [vmem:[%s873_s2 + $0x50] sm:$0xff]  ;;  %v418_v19 = vld [vmem:[%s873_s2 + $0x40] sm:$0xff]  ;;  %v421_v23 = vld [vmem:[%s873_s2 + $0x58] sm:$0xff] }
  0x16   :  { %v411_v28 = vld [vmem:[%s873_s2 + $0x8] sm:$0xff]  ;;  %v416_v44 = vld [vmem:[%s873_s2 + $0x30] sm:$0xff]  ;;  %v414_v46 = vld [vmem:[%s873_s2 + $0x20] sm:$0xff]  ;;  %p663_p3 = por %p662_p2, %p661_p1 }
  0x17   :  { %600 = vmatpush3.bf16.msra.mxu0 %v645_v7  ;;  %634 = vmatpush3.bf16.msra.mxu1 %v645_v7  ;;  %v419_v29 = vld [vmem:[%s873_s2 + $0x48] sm:$0xff]  ;;  %v424_v45 = vld [vmem:[%s873_s2 + $0x70] sm:$0xff]  ;;  %v422_v47 = vld [vmem:[%s873_s2 + $0x60] sm:$0xff] }
  0x18   :  { %601 = vmatprep.subr.bf16.mxu0 %v646_v8  ;;  %627 = vmatprep.subr.bf16.mxu1 %v646_v8  ;;  %v417_v50 = vld [vmem:[%s873_s2 + $0x38] sm:$0xff]  ;;  %v415_v56 = vld [vmem:[%s873_s2 + $0x28] sm:$0xff]  ;;  %p664_p4 = pnand %p663_p3, %p657_p0 }
  0x19   :  { %v425_v51 = vld [vmem:[%s873_s2 + $0x78] sm:$0xff]  ;;  %v423_v57 = vld [vmem:[%s873_s2 + $0x68] sm:$0xff] }
  0x1b   :  { %602 = vmatpush3.bf16.msra.mxu0 %v646_v8  ;;  %635 = vmatpush3.bf16.msra.mxu1 %v646_v8 }
  0x1c   :  { %603 = vmatprep.subr.bf16.mxu0 %v647_v9  ;;  %628 = vmatprep.subr.bf16.mxu1 %v647_v9 }
  0x1f   :  { %604 = vmatpush3.bf16.msra.mxu0 %v647_v9  ;;  %636 = vmatpush3.bf16.msra.mxu1 %v647_v9 }
  0x22   :  { %606 = vmatmul.mubr.bf16.vlgmr.msra.gmra.mrb[0].mxu0 %v650_v10  ;;  %614 = vmatmul.mubr.bf16.vlgmr.msra.gmra.mrb[0].mxu1 %v651_v11 }
  0x23   :  { %609 = vmatprep.mubr.bf16.mxu0 %v652_v12  ;;  %617 = vmatprep.mubr.bf16.mxu1 %v653_v13 }
  0x2a   :  { %610 = vmatmul.mubr.bf16.gmra.mrb[4].mxu0 %v654_v14  ;;  %618 = vmatmul.mubr.bf16.gmra.mrb[4].mxu1 %v655_v15 }
  0xf5   :  { %v607_v20 = vpop.f32.mrb[0].mxu0  ;;  %v615_v21 = vpop.f32.mrb[0].mxu1 }
  0xf6   :  { %v428_v24 = vadd.f32 %v607_v20, %v412_v16  ;;  %v436_v25 = vadd.f32 %v615_v21, %v420_v17  ;;  %v216_v26 = vpop.f32.mrb[1].mxu0  ;;  %v248_v27 = vpop.f32.mrb[1].mxu1 }
  0xf7   :  { %v426_v30 = vadd.f32 %v410_v18, %v216_v26  ;;  %v434_v31 = vadd.f32 %v418_v19, %v248_v27  ;;  %v608_v32 = vpop.f32.mrb[2].mxu0  ;;  %v616_v33 = vpop.f32.mrb[2].mxu1 }
  0xf8   :  { %444 = vst [vmem:[%s875_s4 + $0x10] sm:$0xff] %v428_v24  ;;  %452 = vst [vmem:[%s875_s4 + $0x50] sm:$0xff] %v436_v25  ;;  %v534_v34 = vpack.c.bf16 %v608_v32, %v607_v20  ;;  %v429_v35 = vadd.f32 %v608_v32, %v413_v22  ;;  %v554_v36 = vpack.c.bf16 %v616_v33, %v615_v21  ;;  %v219_v38 = vpop.f32.mrb[3].mxu0  ;;  %v251_v39 = vpop.f32.mrb[3].mxu1 }
  0xf9   :  { %v437_v37 = vadd.f32 %v616_v33, %v421_v23  ;;  %442 = vst [vmem:[%s875_s4] sm:$0xff] %v426_v30  ;;  %450 = vst [vmem:[%s875_s4 + $0x40] sm:$0xff] %v434_v31  ;;  %v529_v40 = vpack.c.bf16 %v219_v38, %v216_v26  ;;  %v427_v41 = vadd.f32 %v411_v28, %v219_v38 }
  0xfa   :  { %v549_v42 = vpack.c.bf16 %v251_v39, %v248_v27  ;;  %v435_v43 = vadd.f32 %v419_v29, %v251_v39  ;;  %566 = vst [vmem:[#allocation3 + $0x8] sm:$0xff] %v534_v34   ;;  %445 = vst [vmem:[%s875_s4 + $0x18] sm:$0xff] %v429_v35 }
  0xfb   :  { %570 = vst [vmem:[#allocation3 + $0x28] sm:$0xff] %v554_v36   ;;  %453 = vst [vmem:[%s875_s4 + $0x58] sm:$0xff] %v437_v37 }
  0xfc   :  { %530 = vst [vmem:[#allocation3] sm:$0xff] %v529_v40   ;;  %443 = vst [vmem:[%s875_s4 + $0x8] sm:$0xff] %v427_v41 }
  0xfd   :  { %569 = vst [vmem:[#allocation3 + $0x20] sm:$0xff] %v549_v42   ;;  %451 = vst [vmem:[%s875_s4 + $0x48] sm:$0xff] %v435_v43  ;;  %v611_v48 = vpop.f32.mrb[4].mxu0  ;;  %v619_v49 = vpop.f32.mrb[4].mxu1 }
  0xfe   :  { %v432_v52 = vadd.f32 %v611_v48, %v416_v44  ;;  %v440_v53 = vadd.f32 %v619_v49, %v424_v45  ;;  %v232_v54 = vpop.f32.mrb[5].mxu0  ;;  %v264_v55 = vpop.f32.mrb[5].mxu1 }
  0xff   :  { %v430_v58 = vadd.f32 %v414_v46, %v232_v54  ;;  %v438_v59 = vadd.f32 %v422_v47, %v264_v55  ;;  %v612_v60 = vpop.f32.mrb[6].mxu0  ;;  %v620_v61 = vpop.f32.mrb[6].mxu1 }
 0x100   :  { %448 = vst [vmem:[%s875_s4 + $0x30] sm:$0xff] %v432_v52  ;;  %456 = vst [vmem:[%s875_s4 + $0x70] sm:$0xff] %v440_v53  ;;  %v544_v62 = vpack.c.bf16 %v612_v60, %v611_v48  ;;  %v433_v63 = vadd.f32 %v612_v60, %v417_v50  ;;  %v564_v0 = vpack.c.bf16 %v620_v61, %v619_v49  ;;  %v235_v2 = vpop.f32.mrb[7].mxu0  ;;  %v267_v3 = vpop.f32.mrb[7].mxu1 }
 0x101   :  { %v441_v1 = vadd.f32 %v620_v61, %v425_v51  ;;  %446 = vst [vmem:[%s875_s4 + $0x20] sm:$0xff] %v430_v58  ;;  %454 = vst [vmem:[%s875_s4 + $0x60] sm:$0xff] %v438_v59  ;;  %v539_v4 = vpack.c.bf16 %v235_v2, %v232_v54  ;;  %v431_v5 = vadd.f32 %v415_v56, %v235_v2 }
 0x102   :  { %v559_v6 = vpack.c.bf16 %v267_v3, %v264_v55  ;;  %v439_v7 = vadd.f32 %v423_v57, %v267_v3  ;;  %568 = vst [vmem:[#allocation3 + $0x18] sm:$0xff] %v544_v62   ;;  %449 = vst [vmem:[%s875_s4 + $0x38] sm:$0xff] %v433_v63 }
 0x103   :  { %572 = vst [vmem:[#allocation3 + $0x38] sm:$0xff] %v564_v0   ;;  %457 = vst [vmem:[%s875_s4 + $0x78] sm:$0xff] %v441_v1 }
 0x104   :  { %567 = vst [vmem:[#allocation3 + $0x10] sm:$0xff] %v539_v4   ;;  %447 = vst [vmem:[%s875_s4 + $0x28] sm:$0xff] %v431_v5 }
 0x105   :  { %571 = vst [vmem:[#allocation3 + $0x30] sm:$0xff] %v559_v6   ;;  %455 = vst [vmem:[%s875_s4 + $0x68] sm:$0xff] %v439_v7 }
 0x106   :  { %667 = shalt.err (!%p664_p4)
}
 0x107   :  { %s668_s5 = scalar_lea.hbm %s874_s3, 1024 }
 0x108   :  { %p669_p5 = scmp.ne.s32.totalorder %s874_s3, %s668_s5  ;;  %p672_p6 = scmp.lt.u32.totalorder %s668_s5, %s874_s3 }
 0x10a   :  { %p674_p7 = pnand %p672_p6, %p669_p5 }
 0x10c   :  { %677 = shalt.err (!%p674_p7)
}
 0x10d   :  { %s681_s4 = smov 64   ;;  %s682_s11 = smov 4  }
 0x10e   :  { %469 = dma.vmem_to_hbm [thread:$0]  %s834_s10, 1024, %s874_s3, [#allocation4], %s681_s4, %s681_s4, %s682_s11  }
 0x10f   :  { %678 = dma.done.wait [#allocation4], 1024  }
 0x110   :  { %679 = vsyncadd [#allocation4], 4294966272 }
 0x111   :  { %477 = vsyncpa [#allocation4], 1 }

// kernel: orcdf_forward.11
= control target key start
LH: loop header
LB: loop body
LE: loop exit
PB: predicated region body
PF: predicated region fallthrough
CT: control target
= control target key end

     0   :  { %vm31_vm0 = vcmask 261120   ;;  %vm56_vm1 = vcmask 7168   ;;  %s117_s0 = inlined_call_operand.vmem [shape: f32[8,32], index: 0, kind: input, shape index: {}]   ;;  %s118_s2 = inlined_call_operand.vmem [shape: f32[1,32], index: 2, kind: input, shape index: {}]   ;;  %s119_s1 = inlined_call_operand.vmem [shape: f32[8,32], index: 1, kind: input, shape index: {}]   ;;  %s120_s3 = inlined_call_operand.vmem [shape: f32[1,32], index: 3, kind: input, shape index: {}]   ;;  %s121_s4 = inlined_call_operand.<no memory space> [shape: f32[1], index: 4, kind: input, shape index: {}]   ;;  %s122_s5 = inlined_call_operand.vmem [shape: f32[8,1], index: 5, kind: output, shape index: {}]  }
   0x1   :  { %v22_v0 = vld [vmem:[%s117_s0] sm:$0xff]  ;;  %v48_v9 = vstv %s121_s4 }
   0x2   :  { %v62_v1 = vld [vmem:[%s118_s2] ss:$0 sm:$0xff] }
   0x3   :  { %v35_v2 = vld [vmem:[%s119_s1] sm:$0xff]  ;;  %v30_v3 = vmul.f32 %v62_v1, %v22_v0 }
   0x4   :  { %v63_v4 = vld [vmem:[%s120_s3] ss:$0 sm:$0xff] }
   0x5   :  { %v43_v5 = vmul.f32 %v63_v4, %v35_v2  ;;  %v32_v6 = vsel %vm31_vm0, %v30_v3, 0.0 }
   0x6   :  { %33 = vadd.xlane.f32.xlu0 %v32_v6 }
   0x7   :  { %v44_v7 = vsel %vm31_vm0, %v43_v5, 0.0 }
   0xa   :  { %45 = vadd.xlane.f32.xlu0 %v44_v7 }
  0x93   :  { %v34_v8 = vpop.xlane.xlu0 %33 }
  0x97   :  { %v46_v10 = vpop.xlane.xlu0 %45 }
  0x98   :  { %v47_v11 = vadd.f32 %v46_v10, %v34_v8 }
  0x9a   :  { %v49_v12 = vadd.f32 %v48_v9, %v47_v11 }
  0x9c   :  { %v64_v13 = vmul.f32 -1.442695, %v49_v12 }
  0x9e   :  { %65 = vpow2.f32 %v64_v13 }
  0xa8   :  { %v66_v14 = vpop.eup %65 }
  0xa9   :  { %v53_v15 = vadd.f32 1.0, %v66_v14 }
  0xab   :  { %67 = vrcp.f32 %v53_v15 }
  0xb5   :  { %v68_v16 = vpop.eup %67 }
  0xb6   :  { %57 = vst.msk [vmem:[%s122_s5] sm:$0xff] %vm56_vm1, %v68_v16 }

</bundles_post_ra>
